<compile_context>
chip_gen: v5e
topology: v5e:2x2
jax: 0.10.0
libtpu: 0.0.40
codegen_flags: <defaults>
</compile_context>

<pallas_src>
import functools

import jax
import jax.numpy as jnp
from jax.experimental import pallas as pl
from jax.experimental.pallas import tpu as pltpu


def _round_up(x, m):
    return (x + m - 1) // m * m


def _pick_grid_steps(batch):
    """One grid step per TensorCore: v7x exposes 2 TCs (keep both busy),
    v5e/v6e expose 1 (a single fully-folded step is fastest)."""
    try:
        cores = int(getattr(jax.devices()[0], "num_cores", 1) or 1)
    except Exception:  # defensive: default to maximum folding
        cores = 1
    cores = max(1, cores)
    best = 1
    for d in range(1, min(cores, batch) + 1):
        if batch % d == 0:
            best = d
    return best


# ----------------------------------------------------------------------------
# Fused kernel: conv3x3+ReLU -> conv3x3+ReLU -> conv1x1, `imgs` images/step.
# ----------------------------------------------------------------------------
def _segmenter_kernel(x_ref, w0_ref, b0_ref, w1_ref, b1_ref, wh_ref, bh_ref,
                      out_ref, feat_ref, *, H, W):
    """Channel-major, lane-dense layout.  L = imgs_per_step * H * W.

    x_ref:  (1, Cpad, L) f32         w0_ref: (9, Cmid, Cpad)  bf16
    b0_ref: (Cmid, 1) f32            w1_ref: (9, Cfeat, Cmid) bf16
    b1_ref: (Cfeat, 1) f32           wh_ref: (Npad, Cfeat)    bf16
    bh_ref: (Npad, 1) f32
    out_ref:  (1, Npad, L) f32       feat_ref: (1, Cfeat, L) f32
    """
    HW = H * W
    L = x_ref.shape[-1]              # batch folded onto the lane axis

    # ---- halo masks: hoisted, computed ONCE, reused by both 3x3 convs.
    # Per-image local indices so the lane-roll wrap never crosses image seams.
    idx = jax.lax.broadcasted_iota(jnp.int32, (1, L), 1)
    if HW & (HW - 1) == 0:
        idx_loc = idx & (HW - 1)                     # per-image pixel index
    else:
        idx_loc = idx - (idx // HW) * HW
    if W & (W - 1) == 0:
        w_idx = idx_loc & (W - 1)                    # per-image column index
    else:
        w_idx = idx_loc - (idx_loc // W) * W

    shifts, masks = [], []
    for kh in range(3):
        for kw in range(3):
            dh, dw = kh - 1, kw - 1
            valid = None
            if dh != 0:
                valid = (idx_loc >= -dh * W) & (idx_loc < HW - dh * W)
            if dw == -1:
                m = w_idx >= 1
                valid = m if valid is None else valid & m
            elif dw == 1:
                m = w_idx < W - 1
                valid = m if valid is None else valid & m
            shifts.append(dh * W + dw)
            masks.append(valid)

    def conv3x3_relu(x, w_ref, b_ref):
        """x: (Cin_pad, L) f32.  9 per-tap MXU matmuls accumulated in f32
        vregs (no im2col scratch / VMEM roundtrip)."""
        acc = None
        for tap in range(9):
            valid = masks[tap]
            if valid is None:                        # center tap, no halo
                tap_val = x
            else:
                # rolled[c, p] == x[c, (p + shift) mod L]; masks kill both
                # out-of-image taps and any wrap across image/batch seams.
                rolled = pltpu.roll(x, shift=(-shifts[tap]) % L, axis=1)
                tap_val = jnp.where(valid, rolled, 0.0)
            y = jnp.dot(w_ref[tap], tap_val.astype(jnp.bfloat16),
                        preferred_element_type=jnp.float32)
            acc = y if acc is None else acc + y
        return jnp.maximum(acc + b_ref[...], 0.0)    # bias + ReLU in f32

    x = x_ref[0]                                     # (Cpad, L) f32
    h = conv3x3_relu(x, w0_ref, b0_ref)              # (Cmid,  L) f32
    feat = conv3x3_relu(h, w1_ref, b1_ref)           # (Cfeat, L) f32
    feat_ref[0] = feat.astype(feat_ref.dtype)

    out = jnp.dot(wh_ref[...], feat.astype(jnp.bfloat16),   # 1x1 head conv
                  preferred_element_type=jnp.float32) + bh_ref[...]
    out_ref[0] = out.astype(out_ref.dtype)


# ----------------------------------------------------------------------------
# Wrapper: weight prep (once, tiny) + fused pallas_call.
# ----------------------------------------------------------------------------
def _prep_conv3x3_w(w_hwio, c_pad):
    """(3,3,Cin,Cout) HWIO -> (9, Cout, c_pad) bf16 (tap-major, Cin padded)."""
    kh, kw, cin, cout = w_hwio.shape
    w = jnp.transpose(w_hwio, (0, 1, 3, 2))          # (3, 3, Cout, Cin)
    if cin < c_pad:
        w = jnp.pad(w, ((0, 0), (0, 0), (0, 0), (0, c_pad - cin)))
    return w.reshape(kh * kw, cout, c_pad).astype(jnp.bfloat16)


@functools.partial(jax.jit, static_argnames=("grid_steps",))
def segmenter_backbone_forward(params, x_nchw, grid_steps=1):
    B, C, H, W = x_nchw.shape
    HW = H * W

    w0, b0 = params["enc_conv0_w"], params["enc_conv0_b"]
    w1, b1 = params["enc_conv1_w"], params["enc_conv1_b"]
    wh, bh = params["head_w"], params["head_b"]
    c_mid, c_feat, n_cls = w0.shape[-1], w1.shape[-1], wh.shape[-1]
    assert c_mid % 8 == 0 and c_feat % 8 == 0, (
        "intermediate channels must be sublane multiples")
    c_pad = _round_up(C, 8)
    n_pad = _round_up(n_cls, 8)       # full 8-sublane tile -> unmasked stores

    # Static grid choice: fold as many images per step as possible (amortizes
    # per-step overhead); one step per TensorCore keeps v7x's 2 TCs busy.
    grid_steps = max(1, min(int(grid_steps), B))
    if B % grid_steps != 0:
        grid_steps = 1
    imgs = B // grid_steps
    L = imgs * HW

    # Input: (grid_steps, c_pad, imgs*HW), channel-major, images concatenated
    # along the lane axis, channels zero-padded to the 8-sublane tile.
    x = x_nchw.reshape(B, C, HW)
    if C < c_pad:
        x = jnp.pad(x, ((0, 0), (0, c_pad - C), (0, 0)))
    x = (x.reshape(grid_steps, imgs, c_pad, HW)
          .transpose(0, 2, 1, 3)
          .reshape(grid_steps, c_pad, L))

    # Weight prep (tiny, once per call); biases stay f32.
    w0m = _prep_conv3x3_w(w0, c_pad)                 # (9, c_mid,  c_pad) bf16
    w1m = _prep_conv3x3_w(w1, c_mid)                 # (9, c_feat, c_mid) bf16
    whm = jnp.pad(wh.T, ((0, n_pad - n_cls), (0, 0))).astype(jnp.bfloat16)
    b0c = b0.reshape(c_mid, 1)
    b1c = b1.reshape(c_feat, 1)
    bhc = jnp.pad(bh, (0, n_pad - n_cls)).reshape(n_pad, 1)

    flops = 2 * B * HW * (9 * c_pad * c_mid + 9 * c_mid * c_feat
                          + c_feat * n_pad)
    bytes_accessed = (B * (c_pad + n_pad + c_feat) * HW * 4
                      + (9 * c_mid * c_pad + 9 * c_feat * c_mid
                         + n_pad * c_feat) * 2
                      + (c_mid + c_feat + n_pad) * 4)

    kernel = functools.partial(_segmenter_kernel, H=H, W=W)

    out_g, feat_g = pl.pallas_call(
        kernel,
        out_shape=(jax.ShapeDtypeStruct((grid_steps, n_pad, L), jnp.float32),
                   jax.ShapeDtypeStruct((grid_steps, c_feat, L), jnp.float32)),
        grid_spec=pltpu.PrefetchScalarGridSpec(
            num_scalar_prefetch=0,
            grid=(grid_steps,),
            in_specs=[
                pl.BlockSpec((1, c_pad, L), lambda g: (g, 0, 0)),
                pl.BlockSpec((9, c_mid, c_pad), lambda g: (0, 0, 0)),
                pl.BlockSpec((c_mid, 1), lambda g: (0, 0)),
                pl.BlockSpec((9, c_feat, c_mid), lambda g: (0, 0, 0)),
                pl.BlockSpec((c_feat, 1), lambda g: (0, 0)),
                pl.BlockSpec((n_pad, c_feat), lambda g: (0, 0)),
                pl.BlockSpec((n_pad, 1), lambda g: (0, 0)),
            ],
            out_specs=[
                pl.BlockSpec((1, n_pad, L), lambda g: (g, 0, 0)),
                pl.BlockSpec((1, c_feat, L), lambda g: (g, 0, 0)),
            ]),
        compiler_params=pltpu.CompilerParams(
            dimension_semantics=("parallel",)),
        cost_estimate=pl.CostEstimate(flops=flops, transcendentals=0,
                                      bytes_accessed=bytes_accessed),
    )(x, w0m, b0c, w1m, b1c, whm, bhc)

    # Back to NCHW (cheap layout plumbing outside the kernel).
    out = (out_g.reshape(grid_steps, n_pad, imgs, HW)
                .transpose(0, 2, 1, 3)
                .reshape(B, n_pad, H, W)[:, :n_cls])
    feat = (feat_g.reshape(grid_steps, c_feat, imgs, HW)
                  .transpose(0, 2, 1, 3)
                  .reshape(B, c_feat, H, W))
    return out, feat


# ----------------------------------------------------------------------------
# Parameter init (deterministic, in-script; no checkpoint loading)
# ----------------------------------------------------------------------------
def init_params(key, c_in=4, c_mid=8, c_feat=16, n_classes=3):
    k = jax.random.split(key, 6)
    scale = 0.1
    return {
        # stored in HWIO layout (kh, kw, cin, cout)
        "enc_conv0_w": scale * jax.random.normal(k[0], (3, 3, c_in, c_mid),
                                                 jnp.float32),
        "enc_conv0_b": scale * jax.random.normal(k[1], (c_mid,), jnp.float32),
        "enc_conv1_w": scale * jax.random.normal(k[2], (3, 3, c_mid, c_feat),
                                                 jnp.float32),
        "enc_conv1_b": scale * jax.random.normal(k[3], (c_feat,), jnp.float32),
        "head_w": scale * jax.random.normal(k[4], (c_feat, n_classes),
                                            jnp.float32),
        "head_b": scale * jax.random.normal(k[5], (n_classes,), jnp.float32),
    }


# ----------------------------------------------------------------------------
# Reference (pure-JAX, f32) for a correctness sanity check
# ----------------------------------------------------------------------------
def _ref_forward(params, x_nchw):
    x = jnp.transpose(x_nchw, (0, 2, 3, 1))

    def conv(x, w, b):
        y = jax.lax.conv_general_dilated(
            x, w, window_strides=(1, 1), padding="SAME",
            dimension_numbers=("NHWC", "HWIO", "NHWC"))
        return y + b

    h = jax.nn.relu(conv(x, params["enc_conv0_w"], params["enc_conv0_b"]))
    feat = jax.nn.relu(conv(h, params["enc_conv1_w"], params["enc_conv1_b"]))
    out = jnp.einsum("bhwc,cd->bhwd", feat, params["head_w"]) + params["head_b"]
    return (jnp.transpose(out, (0, 3, 1, 2)),
            jnp.transpose(feat, (0, 3, 1, 2)))


if __name__ == "__main__":
    key = jax.random.PRNGKey(0)
    kp, kx = jax.random.split(key)

    B, C, H, W = 2, 4, 16, 16
    params = init_params(kp, c_in=C, c_mid=8, c_feat=16, n_classes=3)
    x = jax.random.normal(kx, (B, C, H, W), jnp.float32)  # NCHW like PyTorch

    out, features = segmenter_backbone_forward(
        params, x, grid_steps=_pick_grid_steps(B))
    jax.block_until_ready((out, features))

    out_ref, feat_ref = _ref_forward(params, x)
    assert out.shape == (B, 3, H, W), out.shape
    assert features.shape == (B, 16, H, W), features.shape
    # Tolerance reflects bf16 MXU operands (f32 accumulation) vs the f32 ref.
    assert jnp.allclose(out, out_ref, atol=3e-2, rtol=3e-2), (
        float(jnp.max(jnp.abs(out - out_ref))))
    assert jnp.allclose(features, feat_ref, atol=3e-2, rtol=3e-2), (
        float(jnp.max(jnp.abs(features - feat_ref))))

    print("KERNEL_OK")
</pallas_src>

<mosaic_0001>
module attributes {stable_mosaic.version = 11 : i64} {
  func.func @_segmenter_kernel(%arg0: i32, %arg1: memref<1x8x512xf32, #tpu.memory_space<vmem>>, %arg2: memref<9x8x8xbf16, #tpu.memory_space<vmem>>, %arg3: memref<8x1xf32, #tpu.memory_space<vmem>>, %arg4: memref<9x16x8xbf16, #tpu.memory_space<vmem>>, %arg5: memref<16x1xf32, #tpu.memory_space<vmem>>, %arg6: memref<8x16xbf16, #tpu.memory_space<vmem>>, %arg7: memref<8x1xf32, #tpu.memory_space<vmem>>, %arg8: memref<1x8x512xf32, #tpu.memory_space<vmem>>, %arg9: memref<1x16x512xf32, #tpu.memory_space<vmem>>) attributes {dimension_semantics = [#tpu.dimension_semantics<parallel>], iteration_bounds = array<i64: 1>, scalar_prefetch = 0 : i64, scratch_operands = 0 : i64, tpu.core_type = #tpu.core_type<tc>, window_params = [{transform_indices = @transform_0, window_bounds = array<i64: 1, 8, 512>}, {pipeline_mode = #tpu.pipeline_mode<synchronous>, transform_indices = @transform_1, window_bounds = array<i64: 9, 8, 8>}, {pipeline_mode = #tpu.pipeline_mode<synchronous>, transform_indices = @transform_2, window_bounds = array<i64: 8, 1>}, {pipeline_mode = #tpu.pipeline_mode<synchronous>, transform_indices = @transform_3, window_bounds = array<i64: 9, 16, 8>}, {pipeline_mode = #tpu.pipeline_mode<synchronous>, transform_indices = @transform_4, window_bounds = array<i64: 16, 1>}, {pipeline_mode = #tpu.pipeline_mode<synchronous>, transform_indices = @transform_5, window_bounds = array<i64: 8, 16>}, {pipeline_mode = #tpu.pipeline_mode<synchronous>, transform_indices = @transform_6, window_bounds = array<i64: 8, 1>}, {transform_indices = @transform_7, window_bounds = array<i64: 1, 8, 512>}, {transform_indices = @transform_8, window_bounds = array<i64: 1, 16, 512>}]} {
    %0 = tpu.iota {dimensions = array<i32: 1>} : vector<1x512xi32>
    %c255_i32 = arith.constant 255 : i32
    %1 = vector.broadcast %c255_i32 : i32 to vector<1x512xi32>
    %2 = arith.andi %0, %1 : vector<1x512xi32>
    %c15_i32 = arith.constant 15 : i32
    %3 = vector.broadcast %c15_i32 : i32 to vector<1x512xi32>
    %4 = arith.andi %2, %3 : vector<1x512xi32>
    %c16_i32 = arith.constant 16 : i32
    %5 = vector.broadcast %c16_i32 : i32 to vector<1x512xi32>
    %6 = arith.cmpi sge, %2, %5 : vector<1x512xi32>
    %c272_i32 = arith.constant 272 : i32
    %7 = vector.broadcast %c272_i32 : i32 to vector<1x512xi32>
    %8 = arith.cmpi slt, %2, %7 : vector<1x512xi32>
    %9 = arith.andi %6, %8 : vector<1x512xi1>
    %c1_i32 = arith.constant 1 : i32
    %10 = vector.broadcast %c1_i32 : i32 to vector<1x512xi32>
    %11 = arith.cmpi sge, %4, %10 : vector<1x512xi32>
    %12 = arith.andi %9, %11 : vector<1x512xi1>
    %c16_i32_0 = arith.constant 16 : i32
    %13 = vector.broadcast %c16_i32_0 : i32 to vector<1x512xi32>
    %14 = arith.cmpi sge, %2, %13 : vector<1x512xi32>
    %c272_i32_1 = arith.constant 272 : i32
    %15 = vector.broadcast %c272_i32_1 : i32 to vector<1x512xi32>
    %16 = arith.cmpi slt, %2, %15 : vector<1x512xi32>
    %17 = arith.andi %14, %16 : vector<1x512xi1>
    %c16_i32_2 = arith.constant 16 : i32
    %18 = vector.broadcast %c16_i32_2 : i32 to vector<1x512xi32>
    %19 = arith.cmpi sge, %2, %18 : vector<1x512xi32>
    %c272_i32_3 = arith.constant 272 : i32
    %20 = vector.broadcast %c272_i32_3 : i32 to vector<1x512xi32>
    %21 = arith.cmpi slt, %2, %20 : vector<1x512xi32>
    %22 = arith.andi %19, %21 : vector<1x512xi1>
    %c15_i32_4 = arith.constant 15 : i32
    %23 = vector.broadcast %c15_i32_4 : i32 to vector<1x512xi32>
    %24 = arith.cmpi slt, %4, %23 : vector<1x512xi32>
    %25 = arith.andi %22, %24 : vector<1x512xi1>
    %c1_i32_5 = arith.constant 1 : i32
    %26 = vector.broadcast %c1_i32_5 : i32 to vector<1x512xi32>
    %27 = arith.cmpi sge, %4, %26 : vector<1x512xi32>
    %c15_i32_6 = arith.constant 15 : i32
    %28 = vector.broadcast %c15_i32_6 : i32 to vector<1x512xi32>
    %29 = arith.cmpi slt, %4, %28 : vector<1x512xi32>
    %c-16_i32 = arith.constant -16 : i32
    %30 = vector.broadcast %c-16_i32 : i32 to vector<1x512xi32>
    %31 = arith.cmpi sge, %2, %30 : vector<1x512xi32>
    %c240_i32 = arith.constant 240 : i32
    %32 = vector.broadcast %c240_i32 : i32 to vector<1x512xi32>
    %33 = arith.cmpi slt, %2, %32 : vector<1x512xi32>
    %34 = arith.andi %31, %33 : vector<1x512xi1>
    %c1_i32_7 = arith.constant 1 : i32
    %35 = vector.broadcast %c1_i32_7 : i32 to vector<1x512xi32>
    %36 = arith.cmpi sge, %4, %35 : vector<1x512xi32>
    %37 = arith.andi %34, %36 : vector<1x512xi1>
    %c-16_i32_8 = arith.constant -16 : i32
    %38 = vector.broadcast %c-16_i32_8 : i32 to vector<1x512xi32>
    %39 = arith.cmpi sge, %2, %38 : vector<1x512xi32>
    %c240_i32_9 = arith.constant 240 : i32
    %40 = vector.broadcast %c240_i32_9 : i32 to vector<1x512xi32>
    %41 = arith.cmpi slt, %2, %40 : vector<1x512xi32>
    %42 = arith.andi %39, %41 : vector<1x512xi1>
    %c-16_i32_10 = arith.constant -16 : i32
    %43 = vector.broadcast %c-16_i32_10 : i32 to vector<1x512xi32>
    %44 = arith.cmpi sge, %2, %43 : vector<1x512xi32>
    %c240_i32_11 = arith.constant 240 : i32
    %45 = vector.broadcast %c240_i32_11 : i32 to vector<1x512xi32>
    %46 = arith.cmpi slt, %2, %45 : vector<1x512xi32>
    %47 = arith.andi %44, %46 : vector<1x512xi1>
    %c15_i32_12 = arith.constant 15 : i32
    %48 = vector.broadcast %c15_i32_12 : i32 to vector<1x512xi32>
    %49 = arith.cmpi slt, %4, %48 : vector<1x512xi32>
    %50 = arith.andi %47, %49 : vector<1x512xi1>
    %c0 = arith.constant 0 : index
    %c0_13 = arith.constant 0 : index
    %c0_14 = arith.constant 0 : index
    %51 = vector.load %arg1[%c0, %c0_13, %c0_14] : memref<1x8x512xf32, #tpu.memory_space<vmem>>, vector<1x8x512xf32>
    %52 = vector.shape_cast %51 : vector<1x8x512xf32> to vector<8x512xf32>
    %c17_i32 = arith.constant 17 : i32
    %53 = tpu.dynamic_rotate %52 by %c17_i32 dim 1 : vector<8x512xf32>, i32 -> vector<8x512xf32>
    %cst = arith.constant 0.000000e+00 : f32
    %54 = vector.shape_cast %12 : vector<1x512xi1> to vector<1x512xi1>
    %55 = vector.broadcast %54 : vector<1x512xi1> to vector<8x512xi1>
    %56 = vector.broadcast %cst : f32 to vector<8x512xf32>
    %57 = arith.select %55, %53, %56 : vector<8x512xi1>, vector<8x512xf32>
    %c0_15 = arith.constant 0 : index
    %c0_16 = arith.constant 0 : index
    %c0_17 = arith.constant 0 : index
    %58 = vector.load %arg2[%c0_15, %c0_16, %c0_17] : memref<9x8x8xbf16, #tpu.memory_space<vmem>>, vector<1x8x8xbf16>
    %59 = vector.shape_cast %58 : vector<1x8x8xbf16> to vector<8x8xbf16>
    %60 = arith.truncf %57 : vector<8x512xf32> to vector<8x512xbf16>
    %cst_18 = arith.constant dense<0.000000e+00> : vector<8x512xf32>
    %61 = tpu.matmul %59, %60, %cst_18 {dimension_numbers = #tpu.dot_dimension_numbers<[1], [0], [0], [1], [0, 0, 1, 1], [], []>} : vector<8x8xbf16>, vector<8x512xbf16>, vector<8x512xf32> -> vector<8x512xf32>
    %c16_i32_19 = arith.constant 16 : i32
    %62 = tpu.dynamic_rotate %52 by %c16_i32_19 dim 1 : vector<8x512xf32>, i32 -> vector<8x512xf32>
    %cst_20 = arith.constant 0.000000e+00 : f32
    %63 = vector.shape_cast %17 : vector<1x512xi1> to vector<1x512xi1>
    %64 = vector.broadcast %63 : vector<1x512xi1> to vector<8x512xi1>
    %65 = vector.broadcast %cst_20 : f32 to vector<8x512xf32>
    %66 = arith.select %64, %62, %65 : vector<8x512xi1>, vector<8x512xf32>
    %c1 = arith.constant 1 : index
    %c0_21 = arith.constant 0 : index
    %c0_22 = arith.constant 0 : index
    %67 = vector.load %arg2[%c1, %c0_21, %c0_22] : memref<9x8x8xbf16, #tpu.memory_space<vmem>>, vector<1x8x8xbf16>
    %68 = vector.shape_cast %67 : vector<1x8x8xbf16> to vector<8x8xbf16>
    %69 = arith.truncf %66 : vector<8x512xf32> to vector<8x512xbf16>
    %cst_23 = arith.constant dense<0.000000e+00> : vector<8x512xf32>
    %70 = tpu.matmul %68, %69, %cst_23 {dimension_numbers = #tpu.dot_dimension_numbers<[1], [0], [0], [1], [0, 0, 1, 1], [], []>} : vector<8x8xbf16>, vector<8x512xbf16>, vector<8x512xf32> -> vector<8x512xf32>
    %71 = arith.addf %61, %70 : vector<8x512xf32>
    %c15_i32_24 = arith.constant 15 : i32
    %72 = tpu.dynamic_rotate %52 by %c15_i32_24 dim 1 : vector<8x512xf32>, i32 -> vector<8x512xf32>
    %cst_25 = arith.constant 0.000000e+00 : f32
    %73 = vector.shape_cast %25 : vector<1x512xi1> to vector<1x512xi1>
    %74 = vector.broadcast %73 : vector<1x512xi1> to vector<8x512xi1>
    %75 = vector.broadcast %cst_25 : f32 to vector<8x512xf32>
    %76 = arith.select %74, %72, %75 : vector<8x512xi1>, vector<8x512xf32>
    %c2 = arith.constant 2 : index
    %c0_26 = arith.constant 0 : index
    %c0_27 = arith.constant 0 : index
    %77 = vector.load %arg2[%c2, %c0_26, %c0_27] : memref<9x8x8xbf16, #tpu.memory_space<vmem>>, vector<1x8x8xbf16>
    %78 = vector.shape_cast %77 : vector<1x8x8xbf16> to vector<8x8xbf16>
    %79 = arith.truncf %76 : vector<8x512xf32> to vector<8x512xbf16>
    %cst_28 = arith.constant dense<0.000000e+00> : vector<8x512xf32>
    %80 = tpu.matmul %78, %79, %cst_28 {dimension_numbers = #tpu.dot_dimension_numbers<[1], [0], [0], [1], [0, 0, 1, 1], [], []>} : vector<8x8xbf16>, vector<8x512xbf16>, vector<8x512xf32> -> vector<8x512xf32>
    %81 = arith.addf %71, %80 : vector<8x512xf32>
    %c1_i32_29 = arith.constant 1 : i32
    %82 = tpu.dynamic_rotate %52 by %c1_i32_29 dim 1 : vector<8x512xf32>, i32 -> vector<8x512xf32>
    %cst_30 = arith.constant 0.000000e+00 : f32
    %83 = vector.shape_cast %27 : vector<1x512xi1> to vector<1x512xi1>
    %84 = vector.broadcast %83 : vector<1x512xi1> to vector<8x512xi1>
    %85 = vector.broadcast %cst_30 : f32 to vector<8x512xf32>
    %86 = arith.select %84, %82, %85 : vector<8x512xi1>, vector<8x512xf32>
    %c3 = arith.constant 3 : index
    %c0_31 = arith.constant 0 : index
    %c0_32 = arith.constant 0 : index
    %87 = vector.load %arg2[%c3, %c0_31, %c0_32] : memref<9x8x8xbf16, #tpu.memory_space<vmem>>, vector<1x8x8xbf16>
    %88 = vector.shape_cast %87 : vector<1x8x8xbf16> to vector<8x8xbf16>
    %89 = arith.truncf %86 : vector<8x512xf32> to vector<8x512xbf16>
    %cst_33 = arith.constant dense<0.000000e+00> : vector<8x512xf32>
    %90 = tpu.matmul %88, %89, %cst_33 {dimension_numbers = #tpu.dot_dimension_numbers<[1], [0], [0], [1], [0, 0, 1, 1], [], []>} : vector<8x8xbf16>, vector<8x512xbf16>, vector<8x512xf32> -> vector<8x512xf32>
    %91 = arith.addf %81, %90 : vector<8x512xf32>
    %c4 = arith.constant 4 : index
    %c0_34 = arith.constant 0 : index
    %c0_35 = arith.constant 0 : index
    %92 = vector.load %arg2[%c4, %c0_34, %c0_35] : memref<9x8x8xbf16, #tpu.memory_space<vmem>>, vector<1x8x8xbf16>
    %93 = vector.shape_cast %92 : vector<1x8x8xbf16> to vector<8x8xbf16>
    %94 = arith.truncf %52 : vector<8x512xf32> to vector<8x512xbf16>
    %cst_36 = arith.constant dense<0.000000e+00> : vector<8x512xf32>
    %95 = tpu.matmul %93, %94, %cst_36 {dimension_numbers = #tpu.dot_dimension_numbers<[1], [0], [0], [1], [0, 0, 1, 1], [], []>} : vector<8x8xbf16>, vector<8x512xbf16>, vector<8x512xf32> -> vector<8x512xf32>
    %96 = arith.addf %91, %95 : vector<8x512xf32>
    %c511_i32 = arith.constant 511 : i32
    %97 = tpu.dynamic_rotate %52 by %c511_i32 dim 1 : vector<8x512xf32>, i32 -> vector<8x512xf32>
    %cst_37 = arith.constant 0.000000e+00 : f32
    %98 = vector.shape_cast %29 : vector<1x512xi1> to vector<1x512xi1>
    %99 = vector.broadcast %98 : vector<1x512xi1> to vector<8x512xi1>
    %100 = vector.broadcast %cst_37 : f32 to vector<8x512xf32>
    %101 = arith.select %99, %97, %100 : vector<8x512xi1>, vector<8x512xf32>
    %c5 = arith.constant 5 : index
    %c0_38 = arith.constant 0 : index
    %c0_39 = arith.constant 0 : index
    %102 = vector.load %arg2[%c5, %c0_38, %c0_39] : memref<9x8x8xbf16, #tpu.memory_space<vmem>>, vector<1x8x8xbf16>
    %103 = vector.shape_cast %102 : vector<1x8x8xbf16> to vector<8x8xbf16>
    %104 = arith.truncf %101 : vector<8x512xf32> to vector<8x512xbf16>
    %cst_40 = arith.constant dense<0.000000e+00> : vector<8x512xf32>
    %105 = tpu.matmul %103, %104, %cst_40 {dimension_numbers = #tpu.dot_dimension_numbers<[1], [0], [0], [1], [0, 0, 1, 1], [], []>} : vector<8x8xbf16>, vector<8x512xbf16>, vector<8x512xf32> -> vector<8x512xf32>
    %106 = arith.addf %96, %105 : vector<8x512xf32>
    %c497_i32 = arith.constant 497 : i32
    %107 = tpu.dynamic_rotate %52 by %c497_i32 dim 1 : vector<8x512xf32>, i32 -> vector<8x512xf32>
    %cst_41 = arith.constant 0.000000e+00 : f32
    %108 = vector.shape_cast %37 : vector<1x512xi1> to vector<1x512xi1>
    %109 = vector.broadcast %108 : vector<1x512xi1> to vector<8x512xi1>
    %110 = vector.broadcast %cst_41 : f32 to vector<8x512xf32>
    %111 = arith.select %109, %107, %110 : vector<8x512xi1>, vector<8x512xf32>
    %c6 = arith.constant 6 : index
    %c0_42 = arith.constant 0 : index
    %c0_43 = arith.constant 0 : index
    %112 = vector.load %arg2[%c6, %c0_42, %c0_43] : memref<9x8x8xbf16, #tpu.memory_space<vmem>>, vector<1x8x8xbf16>
    %113 = vector.shape_cast %112 : vector<1x8x8xbf16> to vector<8x8xbf16>
    %114 = arith.truncf %111 : vector<8x512xf32> to vector<8x512xbf16>
    %cst_44 = arith.constant dense<0.000000e+00> : vector<8x512xf32>
    %115 = tpu.matmul %113, %114, %cst_44 {dimension_numbers = #tpu.dot_dimension_numbers<[1], [0], [0], [1], [0, 0, 1, 1], [], []>} : vector<8x8xbf16>, vector<8x512xbf16>, vector<8x512xf32> -> vector<8x512xf32>
    %116 = arith.addf %106, %115 : vector<8x512xf32>
    %c496_i32 = arith.constant 496 : i32
    %117 = tpu.dynamic_rotate %52 by %c496_i32 dim 1 : vector<8x512xf32>, i32 -> vector<8x512xf32>
    %cst_45 = arith.constant 0.000000e+00 : f32
    %118 = vector.shape_cast %42 : vector<1x512xi1> to vector<1x512xi1>
    %119 = vector.broadcast %118 : vector<1x512xi1> to vector<8x512xi1>
    %120 = vector.broadcast %cst_45 : f32 to vector<8x512xf32>
    %121 = arith.select %119, %117, %120 : vector<8x512xi1>, vector<8x512xf32>
    %c7 = arith.constant 7 : index
    %c0_46 = arith.constant 0 : index
    %c0_47 = arith.constant 0 : index
    %122 = vector.load %arg2[%c7, %c0_46, %c0_47] : memref<9x8x8xbf16, #tpu.memory_space<vmem>>, vector<1x8x8xbf16>
    %123 = vector.shape_cast %122 : vector<1x8x8xbf16> to vector<8x8xbf16>
    %124 = arith.truncf %121 : vector<8x512xf32> to vector<8x512xbf16>
    %cst_48 = arith.constant dense<0.000000e+00> : vector<8x512xf32>
    %125 = tpu.matmul %123, %124, %cst_48 {dimension_numbers = #tpu.dot_dimension_numbers<[1], [0], [0], [1], [0, 0, 1, 1], [], []>} : vector<8x8xbf16>, vector<8x512xbf16>, vector<8x512xf32> -> vector<8x512xf32>
    %126 = arith.addf %116, %125 : vector<8x512xf32>
    %c495_i32 = arith.constant 495 : i32
    %127 = tpu.dynamic_rotate %52 by %c495_i32 dim 1 : vector<8x512xf32>, i32 -> vector<8x512xf32>
    %cst_49 = arith.constant 0.000000e+00 : f32
    %128 = vector.shape_cast %50 : vector<1x512xi1> to vector<1x512xi1>
    %129 = vector.broadcast %128 : vector<1x512xi1> to vector<8x512xi1>
    %130 = vector.broadcast %cst_49 : f32 to vector<8x512xf32>
    %131 = arith.select %129, %127, %130 : vector<8x512xi1>, vector<8x512xf32>
    %c8 = arith.constant 8 : index
    %c0_50 = arith.constant 0 : index
    %c0_51 = arith.constant 0 : index
    %132 = vector.load %arg2[%c8, %c0_50, %c0_51] : memref<9x8x8xbf16, #tpu.memory_space<vmem>>, vector<1x8x8xbf16>
    %133 = vector.shape_cast %132 : vector<1x8x8xbf16> to vector<8x8xbf16>
    %134 = arith.truncf %131 : vector<8x512xf32> to vector<8x512xbf16>
    %cst_52 = arith.constant dense<0.000000e+00> : vector<8x512xf32>
    %135 = tpu.matmul %133, %134, %cst_52 {dimension_numbers = #tpu.dot_dimension_numbers<[1], [0], [0], [1], [0, 0, 1, 1], [], []>} : vector<8x8xbf16>, vector<8x512xbf16>, vector<8x512xf32> -> vector<8x512xf32>
    %136 = arith.addf %126, %135 : vector<8x512xf32>
    %c0_53 = arith.constant 0 : index
    %c0_54 = arith.constant 0 : index
    %137 = vector.load %arg3[%c0_53, %c0_54] : memref<8x1xf32, #tpu.memory_space<vmem>>, vector<8x1xf32>
    %138 = vector.broadcast %137 : vector<8x1xf32> to vector<8x512xf32>
    %139 = arith.addf %136, %138 : vector<8x512xf32>
    %cst_55 = arith.constant 0.000000e+00 : f32
    %140 = vector.broadcast %cst_55 : f32 to vector<8x512xf32>
    %141 = arith.maximumf %139, %140 : vector<8x512xf32>
    %c17_i32_56 = arith.constant 17 : i32
    %142 = tpu.dynamic_rotate %141 by %c17_i32_56 dim 1 : vector<8x512xf32>, i32 -> vector<8x512xf32>
    %cst_57 = arith.constant 0.000000e+00 : f32
    %143 = vector.shape_cast %12 : vector<1x512xi1> to vector<1x512xi1>
    %144 = vector.broadcast %143 : vector<1x512xi1> to vector<8x512xi1>
    %145 = vector.broadcast %cst_57 : f32 to vector<8x512xf32>
    %146 = arith.select %144, %142, %145 : vector<8x512xi1>, vector<8x512xf32>
    %c0_58 = arith.constant 0 : index
    %c0_59 = arith.constant 0 : index
    %c0_60 = arith.constant 0 : index
    %147 = vector.load %arg4[%c0_58, %c0_59, %c0_60] : memref<9x16x8xbf16, #tpu.memory_space<vmem>>, vector<1x16x8xbf16>
    %148 = vector.shape_cast %147 : vector<1x16x8xbf16> to vector<16x8xbf16>
    %149 = arith.truncf %146 : vector<8x512xf32> to vector<8x512xbf16>
    %cst_61 = arith.constant dense<0.000000e+00> : vector<16x512xf32>
    %150 = tpu.matmul %148, %149, %cst_61 {dimension_numbers = #tpu.dot_dimension_numbers<[1], [0], [0], [1], [0, 0, 1, 1], [], []>} : vector<16x8xbf16>, vector<8x512xbf16>, vector<16x512xf32> -> vector<16x512xf32>
    %c16_i32_62 = arith.constant 16 : i32
    %151 = tpu.dynamic_rotate %141 by %c16_i32_62 dim 1 : vector<8x512xf32>, i32 -> vector<8x512xf32>
    %cst_63 = arith.constant 0.000000e+00 : f32
    %152 = vector.shape_cast %17 : vector<1x512xi1> to vector<1x512xi1>
    %153 = vector.broadcast %152 : vector<1x512xi1> to vector<8x512xi1>
    %154 = vector.broadcast %cst_63 : f32 to vector<8x512xf32>
    %155 = arith.select %153, %151, %154 : vector<8x512xi1>, vector<8x512xf32>
    %c1_64 = arith.constant 1 : index
    %c0_65 = arith.constant 0 : index
    %c0_66 = arith.constant 0 : index
    %156 = vector.load %arg4[%c1_64, %c0_65, %c0_66] : memref<9x16x8xbf16, #tpu.memory_space<vmem>>, vector<1x16x8xbf16>
    %157 = vector.shape_cast %156 : vector<1x16x8xbf16> to vector<16x8xbf16>
    %158 = arith.truncf %155 : vector<8x512xf32> to vector<8x512xbf16>
    %cst_67 = arith.constant dense<0.000000e+00> : vector<16x512xf32>
    %159 = tpu.matmul %157, %158, %cst_67 {dimension_numbers = #tpu.dot_dimension_numbers<[1], [0], [0], [1], [0, 0, 1, 1], [], []>} : vector<16x8xbf16>, vector<8x512xbf16>, vector<16x512xf32> -> vector<16x512xf32>
    %160 = arith.addf %150, %159 : vector<16x512xf32>
    %c15_i32_68 = arith.constant 15 : i32
    %161 = tpu.dynamic_rotate %141 by %c15_i32_68 dim 1 : vector<8x512xf32>, i32 -> vector<8x512xf32>
    %cst_69 = arith.constant 0.000000e+00 : f32
    %162 = vector.shape_cast %25 : vector<1x512xi1> to vector<1x512xi1>
    %163 = vector.broadcast %162 : vector<1x512xi1> to vector<8x512xi1>
    %164 = vector.broadcast %cst_69 : f32 to vector<8x512xf32>
    %165 = arith.select %163, %161, %164 : vector<8x512xi1>, vector<8x512xf32>
    %c2_70 = arith.constant 2 : index
    %c0_71 = arith.constant 0 : index
    %c0_72 = arith.constant 0 : index
    %166 = vector.load %arg4[%c2_70, %c0_71, %c0_72] : memref<9x16x8xbf16, #tpu.memory_space<vmem>>, vector<1x16x8xbf16>
    %167 = vector.shape_cast %166 : vector<1x16x8xbf16> to vector<16x8xbf16>
    %168 = arith.truncf %165 : vector<8x512xf32> to vector<8x512xbf16>
    %cst_73 = arith.constant dense<0.000000e+00> : vector<16x512xf32>
    %169 = tpu.matmul %167, %168, %cst_73 {dimension_numbers = #tpu.dot_dimension_numbers<[1], [0], [0], [1], [0, 0, 1, 1], [], []>} : vector<16x8xbf16>, vector<8x512xbf16>, vector<16x512xf32> -> vector<16x512xf32>
    %170 = arith.addf %160, %169 : vector<16x512xf32>
    %c1_i32_74 = arith.constant 1 : i32
    %171 = tpu.dynamic_rotate %141 by %c1_i32_74 dim 1 : vector<8x512xf32>, i32 -> vector<8x512xf32>
    %cst_75 = arith.constant 0.000000e+00 : f32
    %172 = vector.shape_cast %27 : vector<1x512xi1> to vector<1x512xi1>
    %173 = vector.broadcast %172 : vector<1x512xi1> to vector<8x512xi1>
    %174 = vector.broadcast %cst_75 : f32 to vector<8x512xf32>
    %175 = arith.select %173, %171, %174 : vector<8x512xi1>, vector<8x512xf32>
    %c3_76 = arith.constant 3 : index
    %c0_77 = arith.constant 0 : index
    %c0_78 = arith.constant 0 : index
    %176 = vector.load %arg4[%c3_76, %c0_77, %c0_78] : memref<9x16x8xbf16, #tpu.memory_space<vmem>>, vector<1x16x8xbf16>
    %177 = vector.shape_cast %176 : vector<1x16x8xbf16> to vector<16x8xbf16>
    %178 = arith.truncf %175 : vector<8x512xf32> to vector<8x512xbf16>
    %cst_79 = arith.constant dense<0.000000e+00> : vector<16x512xf32>
    %179 = tpu.matmul %177, %178, %cst_79 {dimension_numbers = #tpu.dot_dimension_numbers<[1], [0], [0], [1], [0, 0, 1, 1], [], []>} : vector<16x8xbf16>, vector<8x512xbf16>, vector<16x512xf32> -> vector<16x512xf32>
    %180 = arith.addf %170, %179 : vector<16x512xf32>
    %c4_80 = arith.constant 4 : index
    %c0_81 = arith.constant 0 : index
    %c0_82 = arith.constant 0 : index
    %181 = vector.load %arg4[%c4_80, %c0_81, %c0_82] : memref<9x16x8xbf16, #tpu.memory_space<vmem>>, vector<1x16x8xbf16>
    %182 = vector.shape_cast %181 : vector<1x16x8xbf16> to vector<16x8xbf16>
    %183 = arith.truncf %141 : vector<8x512xf32> to vector<8x512xbf16>
    %cst_83 = arith.constant dense<0.000000e+00> : vector<16x512xf32>
    %184 = tpu.matmul %182, %183, %cst_83 {dimension_numbers = #tpu.dot_dimension_numbers<[1], [0], [0], [1], [0, 0, 1, 1], [], []>} : vector<16x8xbf16>, vector<8x512xbf16>, vector<16x512xf32> -> vector<16x512xf32>
    %185 = arith.addf %180, %184 : vector<16x512xf32>
    %c511_i32_84 = arith.constant 511 : i32
    %186 = tpu.dynamic_rotate %141 by %c511_i32_84 dim 1 : vector<8x512xf32>, i32 -> vector<8x512xf32>
    %cst_85 = arith.constant 0.000000e+00 : f32
    %187 = vector.shape_cast %29 : vector<1x512xi1> to vector<1x512xi1>
    %188 = vector.broadcast %187 : vector<1x512xi1> to vector<8x512xi1>
    %189 = vector.broadcast %cst_85 : f32 to vector<8x512xf32>
    %190 = arith.select %188, %186, %189 : vector<8x512xi1>, vector<8x512xf32>
    %c5_86 = arith.constant 5 : index
    %c0_87 = arith.constant 0 : index
    %c0_88 = arith.constant 0 : index
    %191 = vector.load %arg4[%c5_86, %c0_87, %c0_88] : memref<9x16x8xbf16, #tpu.memory_space<vmem>>, vector<1x16x8xbf16>
    %192 = vector.shape_cast %191 : vector<1x16x8xbf16> to vector<16x8xbf16>
    %193 = arith.truncf %190 : vector<8x512xf32> to vector<8x512xbf16>
    %cst_89 = arith.constant dense<0.000000e+00> : vector<16x512xf32>
    %194 = tpu.matmul %192, %193, %cst_89 {dimension_numbers = #tpu.dot_dimension_numbers<[1], [0], [0], [1], [0, 0, 1, 1], [], []>} : vector<16x8xbf16>, vector<8x512xbf16>, vector<16x512xf32> -> vector<16x512xf32>
    %195 = arith.addf %185, %194 : vector<16x512xf32>
    %c497_i32_90 = arith.constant 497 : i32
    %196 = tpu.dynamic_rotate %141 by %c497_i32_90 dim 1 : vector<8x512xf32>, i32 -> vector<8x512xf32>
    %cst_91 = arith.constant 0.000000e+00 : f32
    %197 = vector.shape_cast %37 : vector<1x512xi1> to vector<1x512xi1>
    %198 = vector.broadcast %197 : vector<1x512xi1> to vector<8x512xi1>
    %199 = vector.broadcast %cst_91 : f32 to vector<8x512xf32>
    %200 = arith.select %198, %196, %199 : vector<8x512xi1>, vector<8x512xf32>
    %c6_92 = arith.constant 6 : index
    %c0_93 = arith.constant 0 : index
    %c0_94 = arith.constant 0 : index
    %201 = vector.load %arg4[%c6_92, %c0_93, %c0_94] : memref<9x16x8xbf16, #tpu.memory_space<vmem>>, vector<1x16x8xbf16>
    %202 = vector.shape_cast %201 : vector<1x16x8xbf16> to vector<16x8xbf16>
    %203 = arith.truncf %200 : vector<8x512xf32> to vector<8x512xbf16>
    %cst_95 = arith.constant dense<0.000000e+00> : vector<16x512xf32>
    %204 = tpu.matmul %202, %203, %cst_95 {dimension_numbers = #tpu.dot_dimension_numbers<[1], [0], [0], [1], [0, 0, 1, 1], [], []>} : vector<16x8xbf16>, vector<8x512xbf16>, vector<16x512xf32> -> vector<16x512xf32>
    %205 = arith.addf %195, %204 : vector<16x512xf32>
    %c496_i32_96 = arith.constant 496 : i32
    %206 = tpu.dynamic_rotate %141 by %c496_i32_96 dim 1 : vector<8x512xf32>, i32 -> vector<8x512xf32>
    %cst_97 = arith.constant 0.000000e+00 : f32
    %207 = vector.shape_cast %42 : vector<1x512xi1> to vector<1x512xi1>
    %208 = vector.broadcast %207 : vector<1x512xi1> to vector<8x512xi1>
    %209 = vector.broadcast %cst_97 : f32 to vector<8x512xf32>
    %210 = arith.select %208, %206, %209 : vector<8x512xi1>, vector<8x512xf32>
    %c7_98 = arith.constant 7 : index
    %c0_99 = arith.constant 0 : index
    %c0_100 = arith.constant 0 : index
    %211 = vector.load %arg4[%c7_98, %c0_99, %c0_100] : memref<9x16x8xbf16, #tpu.memory_space<vmem>>, vector<1x16x8xbf16>
    %212 = vector.shape_cast %211 : vector<1x16x8xbf16> to vector<16x8xbf16>
    %213 = arith.truncf %210 : vector<8x512xf32> to vector<8x512xbf16>
    %cst_101 = arith.constant dense<0.000000e+00> : vector<16x512xf32>
    %214 = tpu.matmul %212, %213, %cst_101 {dimension_numbers = #tpu.dot_dimension_numbers<[1], [0], [0], [1], [0, 0, 1, 1], [], []>} : vector<16x8xbf16>, vector<8x512xbf16>, vector<16x512xf32> -> vector<16x512xf32>
    %215 = arith.addf %205, %214 : vector<16x512xf32>
    %c495_i32_102 = arith.constant 495 : i32
    %216 = tpu.dynamic_rotate %141 by %c495_i32_102 dim 1 : vector<8x512xf32>, i32 -> vector<8x512xf32>
    %cst_103 = arith.constant 0.000000e+00 : f32
    %217 = vector.shape_cast %50 : vector<1x512xi1> to vector<1x512xi1>
    %218 = vector.broadcast %217 : vector<1x512xi1> to vector<8x512xi1>
    %219 = vector.broadcast %cst_103 : f32 to vector<8x512xf32>
    %220 = arith.select %218, %216, %219 : vector<8x512xi1>, vector<8x512xf32>
    %c8_104 = arith.constant 8 : index
    %c0_105 = arith.constant 0 : index
    %c0_106 = arith.constant 0 : index
    %221 = vector.load %arg4[%c8_104, %c0_105, %c0_106] : memref<9x16x8xbf16, #tpu.memory_space<vmem>>, vector<1x16x8xbf16>
    %222 = vector.shape_cast %221 : vector<1x16x8xbf16> to vector<16x8xbf16>
    %223 = arith.truncf %220 : vector<8x512xf32> to vector<8x512xbf16>
    %cst_107 = arith.constant dense<0.000000e+00> : vector<16x512xf32>
    %224 = tpu.matmul %222, %223, %cst_107 {dimension_numbers = #tpu.dot_dimension_numbers<[1], [0], [0], [1], [0, 0, 1, 1], [], []>} : vector<16x8xbf16>, vector<8x512xbf16>, vector<16x512xf32> -> vector<16x512xf32>
    %225 = arith.addf %215, %224 : vector<16x512xf32>
    %c0_108 = arith.constant 0 : index
    %c0_109 = arith.constant 0 : index
    %226 = vector.load %arg5[%c0_108, %c0_109] : memref<16x1xf32, #tpu.memory_space<vmem>>, vector<16x1xf32>
    %227 = vector.broadcast %226 : vector<16x1xf32> to vector<16x512xf32>
    %228 = arith.addf %225, %227 : vector<16x512xf32>
    %cst_110 = arith.constant 0.000000e+00 : f32
    %229 = vector.broadcast %cst_110 : f32 to vector<16x512xf32>
    %230 = arith.maximumf %228, %229 : vector<16x512xf32>
    %c0_111 = arith.constant 0 : index
    %c0_112 = arith.constant 0 : index
    %c0_113 = arith.constant 0 : index
    %231 = vector.load %arg9[%c0_111, %c0_112, %c0_113] : memref<1x16x512xf32, #tpu.memory_space<vmem>>, vector<1x16x512xf32>
    %232 = vector.shape_cast %231 : vector<1x16x512xf32> to vector<16x512xf32>
    %233 = vector.shape_cast %230 : vector<16x512xf32> to vector<1x16x512xf32>
    tpu.vector_store %arg9[%c0_111, %c0_112, %c0_113], %233 {strides = array<i32>} : memref<1x16x512xf32, #tpu.memory_space<vmem>>, vector<1x16x512xf32>,
    %c0_114 = arith.constant 0 : index
    %c0_115 = arith.constant 0 : index
    %234 = vector.load %arg6[%c0_114, %c0_115] : memref<8x16xbf16, #tpu.memory_space<vmem>>, vector<8x16xbf16>
    %235 = arith.truncf %230 : vector<16x512xf32> to vector<16x512xbf16>
    %cst_116 = arith.constant dense<0.000000e+00> : vector<8x512xf32>
    %236 = tpu.matmul %234, %235, %cst_116 {dimension_numbers = #tpu.dot_dimension_numbers<[1], [0], [0], [1], [0, 0, 1, 1], [], []>} : vector<8x16xbf16>, vector<16x512xbf16>, vector<8x512xf32> -> vector<8x512xf32>
    %c0_117 = arith.constant 0 : index
    %c0_118 = arith.constant 0 : index
    %237 = vector.load %arg7[%c0_117, %c0_118] : memref<8x1xf32, #tpu.memory_space<vmem>>, vector<8x1xf32>
    %238 = vector.broadcast %237 : vector<8x1xf32> to vector<8x512xf32>
    %239 = arith.addf %236, %238 : vector<8x512xf32>
    %c0_119 = arith.constant 0 : index
    %c0_120 = arith.constant 0 : index
    %c0_121 = arith.constant 0 : index
    %240 = vector.load %arg8[%c0_119, %c0_120, %c0_121] : memref<1x8x512xf32, #tpu.memory_space<vmem>>, vector<1x8x512xf32>
    %241 = vector.shape_cast %240 : vector<1x8x512xf32> to vector<8x512xf32>
    %242 = vector.shape_cast %239 : vector<8x512xf32> to vector<1x8x512xf32>
    tpu.vector_store %arg8[%c0_119, %c0_120, %c0_121], %242 {strides = array<i32>} : memref<1x8x512xf32, #tpu.memory_space<vmem>>, vector<1x8x512xf32>,
    return
  }
  func.func @transform_0(%arg0: i32) -> (i32, i32, i32) {
    %c0_i32 = arith.constant 0 : i32
    %c0_i32_0 = arith.constant 0 : i32
    %c0_i32_1 = arith.constant 0 : i32
    return %arg0, %c0_i32, %c0_i32_0 : i32, i32, i32
  }
  func.func @transform_1(%arg0: i32) -> (i32, i32, i32) {
    %c0_i32 = arith.constant 0 : i32
    %c0_i32_0 = arith.constant 0 : i32
    %c0_i32_1 = arith.constant 0 : i32
    %c0_i32_2 = arith.constant 0 : i32
    return %c0_i32, %c0_i32_0, %c0_i32_1 : i32, i32, i32
  }
  func.func @transform_2(%arg0: i32) -> (i32, i32) {
    %c0_i32 = arith.constant 0 : i32
    %c0_i32_0 = arith.constant 0 : i32
    %c0_i32_1 = arith.constant 0 : i32
    return %c0_i32, %c0_i32_0 : i32, i32
  }
  func.func @transform_3(%arg0: i32) -> (i32, i32, i32) {
    %c0_i32 = arith.constant 0 : i32
    %c0_i32_0 = arith.constant 0 : i32
    %c0_i32_1 = arith.constant 0 : i32
    %c0_i32_2 = arith.constant 0 : i32
    return %c0_i32, %c0_i32_0, %c0_i32_1 : i32, i32, i32
  }
  func.func @transform_4(%arg0: i32) -> (i32, i32) {
    %c0_i32 = arith.constant 0 : i32
    %c0_i32_0 = arith.constant 0 : i32
    %c0_i32_1 = arith.constant 0 : i32
    return %c0_i32, %c0_i32_0 : i32, i32
  }
  func.func @transform_5(%arg0: i32) -> (i32, i32) {
    %c0_i32 = arith.constant 0 : i32
    %c0_i32_0 = arith.constant 0 : i32
    %c0_i32_1 = arith.constant 0 : i32
    return %c0_i32, %c0_i32_0 : i32, i32
  }
  func.func @transform_6(%arg0: i32) -> (i32, i32) {
    %c0_i32 = arith.constant 0 : i32
    %c0_i32_0 = arith.constant 0 : i32
    %c0_i32_1 = arith.constant 0 : i32
    return %c0_i32, %c0_i32_0 : i32, i32
  }
  func.func @transform_7(%arg0: i32) -> (i32, i32, i32) {
    %c0_i32 = arith.constant 0 : i32
    %c0_i32_0 = arith.constant 0 : i32
    %c0_i32_1 = arith.constant 0 : i32
    return %arg0, %c0_i32, %c0_i32_0 : i32, i32, i32
  }
  func.func @transform_8(%arg0: i32) -> (i32, i32, i32) {
    %c0_i32 = arith.constant 0 : i32
    %c0_i32_0 = arith.constant 0 : i32
    %c0_i32_1 = arith.constant 0 : i32
    return %arg0, %c0_i32, %c0_i32_0 : i32, i32, i32
  }
}

</mosaic_0001>

<bundles_post_ra>
// kernel: segmenter_backbone_forward.1
= control target key start
LH: loop header
LB: loop body
LE: loop exit
PB: predicated region body
PF: predicated region fallthrough
CT: control target
= control target key end

     0   :  { %s2276_s11 = smov 16   ;;  %s2277_s14 = smov 17   ;;  %v29_v7 = vlaneseq  ;;  %vm3115_vm6 = vcmask 1043456   ;;  %vm3111_vm7 = vcmask 64512   ;;  %s3087_s0 = inlined_call_operand.vmem [shape: f32[1,8,512], index: 0, kind: input, shape index: {}]   ;;  %s3088_s1 = inlined_call_operand.vmem [shape: bf16[9,8,8], index: 1, kind: input, shape index: {}]   ;;  %s3089_s2 = inlined_call_operand.vmem [shape: f32[8,1], index: 2, kind: input, shape index: {}]   ;;  %s3090_s4 = inlined_call_operand.vmem [shape: f32[16,1], index: 4, kind: input, shape index: {}]   ;;  %s3091_s3 = inlined_call_operand.vmem [shape: bf16[9,16,8], index: 3, kind: input, shape index: {}]   ;;  %s3092_s6 = inlined_call_operand.vmem [shape: f32[8,1], index: 6, kind: input, shape index: {}]   ;;  %s3093_s8 = inlined_call_operand.vmem [shape: f32[1,16,512], index: 8, kind: output, shape index: {1}]   ;;  %s3094_s5 = inlined_call_operand.vmem [shape: bf16[8,16], index: 5, kind: input, shape index: {}]   ;;  %s3095_s7 = inlined_call_operand.vmem [shape: f32[1,8,512], index: 7, kind: output, shape index: {0}]  }
   0x1   :  { %v2333_v0 = vld [vmem:[%s3087_s0 + $0x8] sm:$0xff]  ;;  %v2338_v1 = vld [vmem:[%s3087_s0 + $0x10] sm:$0xff]  ;;  %v2343_v2 = vld [vmem:[%s3087_s0] sm:$0xff]  ;;  %s2278_s15 = smov 15   ;;  %s2280_s16 = smov 127  }
   0x2   :  { %v2193_v3 = vpack.i.bf16 %v2338_v1, %v2333_v0  ;;  %124 = vrot.lane.b32.xlu1 %v2343_v2, %s2276_s11  ;;  %v2352_v4 = vld [vmem:[%s3087_s0 + $0x18] sm:$0xff]  ;;  %s2279_s0 = smov 1   ;;  %s2281_s17 = smov 113   ;;  %v2223_v6 = vpack.i.bf16 %v2338_v1, %v2343_v2  ;;  %v2396_v8 = vand.u32 127, %v29_v7  ;;  %v2039_v39 = vld [vmem:[%s3088_s1 + $0x4] sm:$0xf] }
   0x3   :  { %100 = vrot.lane.b32.xlu2 %v2352_v4, %s2277_s14  ;;  %v2213_v5 = vpack.i.bf16 %v2352_v4, %v2338_v1  ;;  %s2282_s18 = smov 112   ;;  %s2283_s19 = smov 111  }
   0x4   :  { %2194 = vrot.lane.b32.xlu0 %v2193_v3, %s2276_s11  ;;  %v32_v10 = vadd.s32 256, %v2396_v8  ;;  %v34_v11 = vand.u32 255, %v2396_v8  ;;  %v2401_v12 = vadd.s32 384, %v2396_v8  ;;  %v2406_v14 = vadd.s32 128, %v2396_v8 }
   0x5   :  { %vm3097_vm0 = vcmp.lt.s32.totalorder %v2396_v8, 17  ;;  %vm3096_vm2 = vcmp.lt.s32.totalorder %v2396_v8, 16  ;;  %vm3101_vm15 = vcmp.lt.s32.totalorder %v2396_v8, 15 }
   0x6   :  { %v2403_v13 = vand.u32 15, %v34_v11  ;;  %v36_v15 = vand.u32 255, %v32_v10  ;;  %v37_v17 = vand.u32 255, %v2401_v12  ;;  %v35_v19 = vand.u32 255, %v2406_v14 }
   0x7   :  { %vm2417_vm4 = vcmp.ge.s32.totalorder %v34_v11, 16 }
   0x8   :  { %vm3107_vm1 = vcmp.ge.s32.totalorder %v2403_v13, 1  ;;  %vm2413_vm3 = vcmp.ge.s32.totalorder %v36_v15, 16  ;;  %v2421_v25 = vand.u32 15, %v36_v15  ;;  %v2435_v28 = vand.u32 15, %v37_v17 }
   0x9   :  { %vm2429_vm5 = vmand %vm2417_vm4, %vm3107_vm1  ;;  %v2443_v31 = vand.u32 15, %v35_v19  ;;  %vm3098_vm11 = vcmp.lt.s32.totalorder %v2403_v13, 15 }
   0xa   :  { %2199 = vrot.lane.b32.xlu1 %v2193_v3, %s2277_s14  ;;  %vm3110_vm8 = vcmp.ge.s32.totalorder %v2435_v28, 1  ;;  %vm3109_vm9 = vcmp.ge.s32.totalorder %v2421_v25, 1  ;;  %vm2495_vm13 = vmand %vm2417_vm4, %vm3098_vm11  ;;  %vm3099_vm14 = vcmp.lt.s32.totalorder %v2421_v25, 15 }
   0xb   :  { %94 = vrot.lane.b32.xlu2 %v2343_v2, %s2277_s14  ;;  %vm3105_vm10 = vcmp.ge.s32.totalorder %v2443_v31, 1  ;;  %vm2470_vm12 = vmand %vm2413_vm3, %vm3109_vm9 }
   0xc   :  { %130 = vrot.lane.b32.xlu0 %v2352_v4, %s2276_s11  ;;  %vm2514_vm11 = vmand %vm2413_vm3, %vm3099_vm14  ;;  %vm3100_vm14 = vcmp.lt.s32.totalorder %v2396_v8, 1 }
  0x12   :  { %297 = vrot.lane.b32.xlu1 %v2352_v4, %s2278_s15 }
  0x13   :  { %291 = vrot.lane.b32.xlu2 %v2343_v2, %s2278_s15 }
  0x14   :  { %2204 = vrot.lane.b32.xlu0 %v2193_v3, %s2278_s15 }
  0x1a   :  { %399 = vrot.lane.b32.xlu1 %v2352_v4, %s2279_s0 }
  0x1b   :  { %393 = vrot.lane.b32.xlu2 %v2343_v2, %s2279_s0 }
  0x1c   :  { %2209 = vrot.lane.b32.xlu0 %v2193_v3, %s2279_s0 }
  0x22   :  { %572 = vrot.lane.b32.xlu1 %v2343_v2, %s2280_s16 }
  0x23   :  { %574 = vrot.lane.b32.xlu2 %v2333_v0, %s2280_s16 }
  0x24   :  { %2214 = vrot.lane.b32.xlu0 %v2213_v5, %s2280_s16 }
  0x2a   :  { %674 = vrot.lane.b32.xlu1 %v2343_v2, %s2281_s17 }
  0x2b   :  { %676 = vrot.lane.b32.xlu2 %v2333_v0, %s2281_s17 }
  0x2c   :  { %2219 = vrot.lane.b32.xlu0 %v2213_v5, %s2281_s17 }
  0x32   :  { %782 = vrot.lane.b32.xlu1 %v2352_v4, %s2282_s18 }
  0x33   :  { %778 = vrot.lane.b32.xlu2 %v2333_v0, %s2282_s18 }
  0x34   :  { %2224 = vrot.lane.b32.xlu0 %v2223_v6, %s2282_s18 }
  0x3a   :  { %878 = vrot.lane.b32.xlu1 %v2343_v2, %s2283_s19 }
  0x3b   :  { %880 = vrot.lane.b32.xlu2 %v2333_v0, %s2283_s19 }
  0x3c   :  { %2229 = vrot.lane.b32.xlu0 %v2213_v5, %s2283_s19 }
  0x5d   :  { %v101_v9 = vpop.permute.xlu2 %100 }
  0x65   :  { %v95_v18 = vpop.permute.xlu2 %94 }
  0x66   :  { %v106_v26 = vsel %vm3097_vm0, %v101_v9, %v95_v18 }
  0x67   :  { %v115_v35 = vsel %vm2429_vm5, %v106_v26, 0.0 }
  0x68   :  { %v120_v43 = vpack.c.bf16 %v115_v35, %v115_v35 }
  0x6a   :  { %v228_v58 = vsel %vm3115_vm6, %v120_v43, 0 }
  0x6d   :  { %v292_v5 = vpop.permute.xlu2 %291 }
  0x74   :  { %v125_v16 = vpop.permute.xlu1 %124 }
  0x76   :  { %v2195_v20 = vpop.permute.xlu0 %2194 }
  0x77   :  { %v2197_v21 = vunpack.i.h.bf16 %v2195_v20  ;;  %v2196_v22 = vunpack.i.l.bf16 %v2195_v20 }
  0x79   :  { %v135_v29 = vsel %vm3096_vm2, %v125_v16, %v2196_v22  ;;  %v134_v30 = vsel %vm3096_vm2, %v2196_v22, %v2197_v21 }
  0x7a   :  { %v152_v32 = vpack.c.bf16 %v135_v29, %v135_v29  ;;  %v147_v33 = vsel %vm2413_vm3, %v134_v30, 0.0 }
  0x7b   :  { %v153_v34 = vpack.c.bf16 %v147_v33, %v147_v33 }
  0x7c   :  { %v164_v36 = vsel %vm3115_vm6, %v152_v32, 0  ;;  %v2200_v37 = vpop.permute.xlu1 %2199 }
  0x7d   :  { %192 = vmatpush.bf16.msra.mxu1 %v164_v36  ;;  %v167_v38 = vsel %vm3115_vm6, %v153_v34, 0  ;;  %v2202_v40 = vunpack.i.h.bf16 %v2200_v37  ;;  %v2201_v41 = vunpack.i.l.bf16 %v2200_v37  ;;  %v394_v37 = vpop.permute.xlu2 %393 }
  0x7e   :  { %v131_v42 = vpop.permute.xlu0 %130  ;;  %205 = vmatpush.bf16.msra.mxu2 %v167_v38 }
  0x7f   :  { %v133_v44 = vsel %vm3096_vm2, %v2197_v21, %v131_v42  ;;  %v136_v45 = vsel %vm3096_vm2, %v131_v42, %v125_v16  ;;  %v105_v46 = vsel %vm3097_vm0, %v95_v18, %v2201_v41  ;;  %v103_v47 = vsel %vm3097_vm0, %v2202_v40, %v101_v9 }
  0x80   :  { %2041 = vmatmul.msk.bf16.vlgmr.msra.gmra.mxu1 %vm3111_vm7, %v2039_v39  ;;  %v154_v49 = vpack.c.bf16 %v133_v44, %v133_v44  ;;  %v145_v50 = vsel %vm2417_vm4, %v136_v45, 0.0  ;;  %v118_v51 = vsel %vm3110_vm8, %v103_v47, 0.0  ;;  %v116_v52 = vsel %vm3105_vm10, %v105_v46, 0.0 }
  0x81   :  { %2042 = vmatmul.msk.bf16.vlgmr.msra.gmra.mxu2 %vm3111_vm7, %v2039_v39  ;;  %v151_v53 = vpack.c.bf16 %v145_v50, %v145_v50  ;;  %v123_v54 = vpack.c.bf16 %v118_v51, %v118_v51  ;;  %v121_v55 = vpack.c.bf16 %v116_v52, %v116_v52  ;;  %v104_v56 = vsel %vm3097_vm0, %v2201_v41, %v2202_v40 }
  0x82   :  { %v170_v57 = vsel %vm3115_vm6, %v154_v49, 0  ;;  %v117_v59 = vsel %vm2470_vm12, %v104_v56, 0.0  ;;  %vm3102_vm2 = vcmp.lt.s32.totalorder %v2443_v31, 15  ;;  %vm3104_vm0 = vcmp.lt.s32.totalorder %v2435_v28, 15 }
  0x83   :  { %218 = vmatpush.bf16.msra.mxu3 %v170_v57  ;;  %v161_v60 = vsel %vm3115_vm6, %v151_v53, 0  ;;  %v237_v61 = vsel %vm3115_vm6, %v123_v54, 0  ;;  %v231_v62 = vsel %vm3115_vm6, %v121_v55, 0  ;;  %v122_v63 = vpack.c.bf16 %v117_v59, %v117_v59 }
  0x84   :  { %179 = vmatpush.bf16.msra.mxu0 %v161_v60  ;;  %v298_v6 = vpop.permute.xlu1 %297  ;;  %259 = vmatpush.bf16.msrb.mxu1 %v231_v62 }
  0x85   :  { %v234_v7 = vsel %vm3115_vm6, %v122_v63, 0  ;;  %v303_v9 = vsel %vm3101_vm15, %v298_v6, %v292_v5  ;;  %v498_v63 = vpack.c.bf16 %v2333_v0, %v2333_v0  ;;  %v497_v0 = vpack.c.bf16 %v2343_v2, %v2343_v2 }
  0x86   :  { %2043 = vmatmul.msk.bf16.vlgmr.msra.gmra.mxu3 %vm3111_vm7, %v2039_v39  ;;  %272 = vmatpush.bf16.msrb.mxu2 %v234_v7  ;;  %v2205_v10 = vpop.permute.xlu0 %2204  ;;  %v312_v11 = vsel %vm2495_vm13, %v303_v9, 0.0 }
  0x87   :  { %285 = vmatpush.bf16.msrb.mxu3 %v237_v61  ;;  %2040 = vmatmul.msk.bf16.vlgmr.msra.gmra.mxu0 %vm3111_vm7, %v2039_v39  ;;  %v2207_v15 = vunpack.i.h.bf16 %v2205_v10  ;;  %v2206_v16 = vunpack.i.l.bf16 %v2205_v10  ;;  %v318_v18 = vpack.c.bf16 %v312_v11, %v312_v11  ;;  %v119_v39 = vld [vmem:[%s3088_s1] sm:$0xf]  ;;  %v508_v7 = vsel %vm3115_vm6, %v498_v63, 0 }
  0x88   :  { %246 = vmatpush.bf16.msrb.mxu0 %v228_v58  ;;  %v500_v10 = vpack.c.bf16 %v2352_v4, %v2352_v4  ;;  %v575_v4 = vpop.permute.xlu2 %574 }
  0x89   :  { %v301_v21 = vsel %vm3101_vm15, %v2206_v16, %v2207_v15  ;;  %v302_v22 = vsel %vm3101_vm15, %v292_v5, %v2206_v16  ;;  %v300_v26 = vsel %vm3101_vm15, %v2207_v15, %v298_v6  ;;  %v326_v29 = vsel %vm3115_vm6, %v318_v18, 0  ;;  %v2048_v6 = vld [vmem:[%s3088_s1 + $0x8] sm:$0xf] }
  0x8a   :  { %v313_v30 = vsel %vm3102_vm2, %v302_v22, 0.0  ;;  %v315_v32 = vsel %vm3104_vm0, %v300_v26, 0.0  ;;  %v314_v33 = vsel %vm2514_vm11, %v301_v21, 0.0  ;;  %v499_v5 = vpack.c.bf16 %v2338_v1, %v2338_v1 }
  0x8b   :  { %v319_v34 = vpack.c.bf16 %v313_v30, %v313_v30  ;;  %v321_v35 = vpack.c.bf16 %v315_v32, %v315_v32  ;;  %v320_v36 = vpack.c.bf16 %v314_v33, %v314_v33  ;;  %v514_v16 = vsel %vm3115_vm6, %v500_v10, 0 }
  0x8c   :  { %344 = vmatpush.bf16.msra.mxu0 %v326_v29  ;;  %v400_v38 = vpop.permute.xlu1 %399  ;;  %v511_v9 = vsel %vm3115_vm6, %v499_v5, 0  ;;  %v505_v18 = vsel %vm3115_vm6, %v497_v0, 0  ;;  %vm3129_vm15 = vcmp.lt.s32.totalorder %v2421_v25, 15 }
  0x8d   :  { %v329_v40 = vsel %vm3115_vm6, %v319_v34, 0  ;;  %v332_v41 = vsel %vm3115_vm6, %v320_v36, 0  ;;  %v335_v42 = vsel %vm3115_vm6, %v321_v35, 0  ;;  %v405_v43 = vsel %vm3100_vm14, %v400_v38, %v394_v37  ;;  %v2053_v35 = vld [vmem:[%s3088_s1 + $0xc] sm:$0xf] }
  0x8e   :  { %357 = vmatpush.bf16.msra.mxu1 %v329_v40  ;;  %370 = vmatpush.bf16.msra.mxu2 %v332_v41  ;;  %v2210_v44 = vpop.permute.xlu0 %2209  ;;  %v414_v45 = vsel %vm3107_vm1, %v405_v43, 0.0 }
  0x8f   :  { %383 = vmatpush.bf16.msra.mxu3 %v335_v42  ;;  %v2212_v46 = vunpack.i.h.bf16 %v2210_v44  ;;  %v2211_v47 = vunpack.i.l.bf16 %v2210_v44  ;;  %v420_v52 = vpack.c.bf16 %v414_v45, %v414_v45 }
  0x90   :  { %2045 = vmatmul.msk.bf16.vlgmr.msrb.gmra.mxu1 %vm3111_vm7, %v119_v39 }
  0x91   :  { %2046 = vmatmul.msk.bf16.vlgmr.msrb.gmra.mxu2 %vm3111_vm7, %v119_v39  ;;  %v403_v49 = vsel %vm3100_vm14, %v2211_v47, %v2212_v46  ;;  %v404_v50 = vsel %vm3100_vm14, %v394_v37, %v2211_v47  ;;  %v402_v51 = vsel %vm3100_vm14, %v2212_v46, %v400_v38  ;;  %v428_v62 = vsel %vm3115_vm6, %v420_v52, 0 }
  0x92   :  { %v415_v53 = vsel %vm3105_vm10, %v404_v50, 0.0  ;;  %v417_v54 = vsel %vm3110_vm8, %v402_v51, 0.0  ;;  %v416_v55 = vsel %vm3109_vm9, %v403_v49, 0.0  ;;  %vm3103_vm14 = vcmp.lt.s32.totalorder %v2396_v8, 127  ;;  %v677_v50 = vpop.permute.xlu2 %676 }
  0x93   :  { %v421_v56 = vpack.c.bf16 %v415_v53, %v415_v53  ;;  %v423_v57 = vpack.c.bf16 %v417_v54, %v417_v54  ;;  %v422_v58 = vpack.c.bf16 %v416_v55, %v416_v55  ;;  %v3131_v49 = vmov 0 }
  0x94   :  { %v573_v22 = vpop.permute.xlu1 %572 }
  0x95   :  { %v431_v59 = vsel %vm3115_vm6, %v421_v56, 0  ;;  %v434_v60 = vsel %vm3115_vm6, %v422_v58, 0  ;;  %v437_v61 = vsel %vm3115_vm6, %v423_v57, 0  ;;  %v583_v33 = vsel %vm3103_vm14, %v573_v22, %v575_v4  ;;  %v2058_v58 = vld [vmem:[%s3088_s1 + $0x10] sm:$0xf] }
  0x96   :  { %2047 = vmatmul.msk.bf16.vlgmr.msrb.gmra.mxu3 %vm3111_vm7, %v119_v39  ;;  %459 = vmatpush.bf16.msrb.mxu1 %v431_v59  ;;  %v2215_v1 = vpop.permute.xlu0 %2214 }
  0x97   :  { %2044 = vmatmul.msk.bf16.vlgmr.msrb.gmra.mxu0 %vm3111_vm7, %v119_v39  ;;  %472 = vmatpush.bf16.msrb.mxu2 %v434_v60  ;;  %v2217_v11 = vunpack.i.h.bf16 %v2215_v1  ;;  %v2216_v15 = vunpack.i.l.bf16 %v2215_v1 }
  0x98   :  { %485 = vmatpush.bf16.msrb.mxu3 %v437_v61  ;;  %446 = vmatpush.bf16.msrb.mxu0 %v428_v62 }
  0x99   :  { %v581_v21 = vsel %vm3103_vm14, %v2216_v15, %v2217_v11  ;;  %v582_v2 = vsel %vm3103_vm14, %v575_v4, %v2216_v15  ;;  %v584_v32 = vsel %vm3103_vm14, %v2217_v11, %v573_v22  ;;  %v2063_v22 = vld [vmem:[%s3088_s1 + $0x14] sm:$0xf] }
  0x9a   :  { %v594_v26 = vsel %vm3102_vm2, %v582_v2, 0.0  ;;  %v595_v29 = vsel %vm3129_vm15, %v581_v21, 0.0  ;;  %v596_v36 = vsel %vm3104_vm0, %v584_v32, 0.0  ;;  %vm3130_vm2 = vcmp.lt.s32.totalorder %v2403_v13, 15  ;;  %v779_v1 = vpop.permute.xlu2 %778 }
  0x9b   :  { %v600_v30 = vpack.c.bf16 %v594_v26, %v594_v26  ;;  %v601_v34 = vpack.c.bf16 %v595_v29, %v595_v29  ;;  %v593_v37 = vsel %vm3130_vm2, %v583_v33, 0.0  ;;  %v602_v40 = vpack.c.bf16 %v596_v36, %v596_v36 }
  0x9c   :  { %v599_v41 = vpack.c.bf16 %v593_v37, %v593_v37  ;;  %vm3106_vm15 = vcmp.lt.s32.totalorder %v2396_v8, 113  ;;  %vm2613_vm2 = vcmp.lt.s32.totalorder %v35_v19, 240  ;;  %vm2630_vm0 = vcmp.lt.s32.totalorder %v37_v17, 240  ;;  %v675_v19 = vpop.permute.xlu1 %674 }
  0x9d   :  { %v610_v38 = vsel %vm3115_vm6, %v600_v30, 0  ;;  %v613_v39 = vsel %vm3115_vm6, %v601_v34, 0  ;;  %v616_v45 = vsel %vm3115_vm6, %v602_v40, 0  ;;  %v3132_v49 = vsel %vm2613_vm2, 4294967295, %v3131_v49  ;;  %vm2622_vm14 = vmand %vm2613_vm2, %vm3105_vm10 }
  0x9e   :  { %v2220_v42 = vpop.permute.xlu0 %2219  ;;  %v607_v46 = vsel %vm3115_vm6, %v599_v41, 0  ;;  %vm2642_vm10 = vmand %vm2630_vm0, %vm3110_vm8  ;;  %v685_v17 = vsel %vm3106_vm15, %v675_v19, %v677_v50  ;;  %v3140_v40 = vmov 0 }
  0x9f   :  { %v2222_v43 = vunpack.i.h.bf16 %v2220_v42  ;;  %v2221_v44 = vunpack.i.l.bf16 %v2220_v42  ;;  %v695_v60 = vsel %vm3107_vm1, %v685_v17, 0.0  ;;  %vm3113_vm1 = vcmp.lt.s32.totalorder %v2396_v8, 111 }
  0xa0   :  { %2050 = vmatmul.msk.bf16.vlgmr.msra.gmra.mxu1 %vm3111_vm7, %v2048_v6  ;;  %v701_v5 = vpack.c.bf16 %v695_v60, %v695_v60 }
  0xa1   :  { %2051 = vmatmul.msk.bf16.vlgmr.msra.gmra.mxu2 %vm3111_vm7, %v2048_v6  ;;  %536 = vmatpush.bf16.msra.mxu1 %v508_v7  ;;  %v683_v47 = vsel %vm3106_vm15, %v2221_v44, %v2222_v43  ;;  %v684_v52 = vsel %vm3106_vm15, %v677_v50, %v2221_v44  ;;  %v686_v12 = vsel %vm3106_vm15, %v2222_v43, %v675_v19  ;;  %vm3108_vm15 = vcmp.lt.s32.totalorder %v2396_v8, 112 }
  0xa2   :  { %549 = vmatpush.bf16.msra.mxu2 %v511_v9  ;;  %v696_v53 = vsel %vm2622_vm14, %v684_v52, 0.0  ;;  %v697_v54 = vsel %vm3109_vm9, %v683_v47, 0.0  ;;  %v698_v59 = vsel %vm2642_vm10, %v686_v12, 0.0  ;;  %v709_v10 = vsel %vm3115_vm6, %v701_v5, 0  ;;  %v881_v41 = vpop.permute.xlu2 %880  ;;  %v2073_v5 = vld [vmem:[%s3088_s1 + $0x1c] sm:$0xf] }
  0xa3   :  { %v702_v55 = vpack.c.bf16 %v696_v53, %v696_v53  ;;  %v703_v57 = vpack.c.bf16 %v697_v54, %v697_v54  ;;  %v704_v63 = vpack.c.bf16 %v698_v59, %v698_v59  ;;  %v3143_v47 = vmov 0  ;;  %v2068_v54 = vld [vmem:[%s3088_s1 + $0x18] sm:$0xf] }
  0xa4   :  { %v783_v15 = vpop.permute.xlu1 %782 }
  0xa5   :  { %v712_v61 = vsel %vm3115_vm6, %v702_v55, 0  ;;  %v715_v62 = vsel %vm3115_vm6, %v703_v57, 0  ;;  %v718_v9 = vsel %vm3115_vm6, %v704_v63, 0  ;;  %v980_v63 = vld [vmem:[%s3089_s2] sm:$0xff] }
  0xa6   :  { %2052 = vmatmul.msk.bf16.vlgmr.msra.gmra.mxu3 %vm3111_vm7, %v2048_v6 }
  0xa7   :  { %2049 = vmatmul.msk.bf16.vlgmr.msra.gmra.mxu0 %vm3111_vm7, %v2048_v6  ;;  %562 = vmatpush.bf16.msra.mxu3 %v514_v16  ;;  %v2225_v6 = vpop.permute.xlu0 %2224 }
  0xa8   :  { %523 = vmatpush.bf16.msra.mxu0 %v505_v18  ;;  %v2227_v7 = vunpack.i.h.bf16 %v2225_v6  ;;  %v2226_v0 = vunpack.i.l.bf16 %v2225_v6 }
  0xaa   :  { %v786_v11 = vsel %vm3108_vm15, %v779_v1, %v2227_v7  ;;  %v785_v18 = vsel %vm3108_vm15, %v2227_v7, %v783_v15  ;;  %v788_v4 = vsel %vm3108_vm15, %v783_v15, %v2226_v0  ;;  %v787_v29 = vsel %vm3108_vm15, %v2226_v0, %v779_v1  ;;  %v2078_v7 = vld [vmem:[%s3088_s1 + $0x20] sm:$0xf] }
  0xab   :  { %v798_v16 = vsel %vm2613_vm2, %v786_v11, 0.0  ;;  %v805_v2 = vpack.c.bf16 %v785_v18, %v785_v18  ;;  %v800_v26 = vsel %vm2630_vm0, %v788_v4, 0.0  ;;  %v803_v34 = vpack.c.bf16 %v787_v29, %v787_v29 }
  0xac   :  { %v804_v21 = vpack.c.bf16 %v798_v16, %v798_v16  ;;  %v806_v33 = vpack.c.bf16 %v800_v26, %v800_v26  ;;  %vm3139_vm15 = vcmp.lt.s32.totalorder %v2443_v31, 15  ;;  %v879_v42 = vpop.permute.xlu1 %878 }
  0xad   :  { %v817_v32 = vsel %vm3115_vm6, %v805_v2, 0  ;;  %v811_v36 = vsel %vm3115_vm6, %v803_v34, 0  ;;  %vm2693_vm9 = vmand %vm2613_vm2, %vm3139_vm15  ;;  %vm3142_vm15 = vcmp.lt.s32.totalorder %v2435_v28, 15  ;;  %v889_v19 = vsel %vm3113_vm1, %v879_v42, %v881_v41 }
  0xae   :  { %v814_v30 = vsel %vm3115_vm6, %v804_v21, 0  ;;  %v3141_v40 = vsel %vm2693_vm9, 4294967295, %v3140_v40  ;;  %vm2708_vm8 = vmand %vm2630_vm0, %vm3142_vm15  ;;  %vm3146_vm15 = vcmp.lt.s32.totalorder %v2403_v13, 15 }
  0xaf   :  { %v2230_v37 = vpop.permute.xlu0 %2229  ;;  %v3144_v47 = vsel %vm2708_vm8, 4294967295, %v3143_v47  ;;  %v899_v12 = vsel %vm3146_vm15, %v889_v19, 0.0 }
  0xb0   :  { %2055 = vmatmul.msk.bf16.vlgmr.msrb.gmra.mxu1 %vm3111_vm7, %v2053_v35  ;;  %v905_v59 = vpack.c.bf16 %v899_v12, %v899_v12 }
  0xb1   :  { %2056 = vmatmul.msk.bf16.vlgmr.msrb.gmra.mxu2 %vm3111_vm7, %v2053_v35  ;;  %638 = vmatpush.bf16.msrb.mxu1 %v610_v38  ;;  %v2232_v38 = vunpack.i.h.bf16 %v2230_v37 }
  0xb2   :  { %651 = vmatpush.bf16.msrb.mxu2 %v613_v39  ;;  %v2231_v39 = vunpack.i.l.bf16 %v2230_v37 }
  0xb3   :  { %v890_v50 = vsel %vm3113_vm1, %v2232_v38, %v879_v42 }
  0xb4   :  { %v887_v43 = vsel %vm3113_vm1, %v2231_v39, %v2232_v38  ;;  %v888_v44 = vsel %vm3113_vm1, %v881_v41, %v2231_v39  ;;  %v902_v55 = vsel %vm2708_vm8, %v890_v50, 0.0 }
  0xb6   :  { %2057 = vmatmul.msk.bf16.vlgmr.msrb.gmra.mxu3 %vm3111_vm7, %v2053_v35 }
  0xb7   :  { %2054 = vmatmul.msk.bf16.vlgmr.msrb.gmra.mxu0 %vm3111_vm7, %v2053_v35  ;;  %664 = vmatpush.bf16.msrb.mxu3 %v616_v45  ;;  %v820_v35 = vsel %vm3115_vm6, %v806_v33, 0  ;;  %v900_v45 = vsel %vm2693_vm9, %v888_v44, 0.0  ;;  %vm3147_vm9 = vcmask 64512  }
  0xb8   :  { %625 = vmatpush.bf16.msrb.mxu0 %v607_v46  ;;  %v906_v46 = vpack.c.bf16 %v900_v45, %v900_v45 }
  0xba   :  { %v916_v17 = vsel %vm3115_vm6, %v906_v46, 0 }
  0xc0   :  { %2060 = vmatmul.msk.bf16.vlgmr.msra.gmra.mxu1 %vm3111_vm7, %v2058_v58 }
  0xc1   :  { %2061 = vmatmul.msk.bf16.vlgmr.msra.gmra.mxu2 %vm3111_vm7, %v2058_v58  ;;  %740 = vmatpush.bf16.msra.mxu1 %v712_v61  ;;  %v913_v61 = vsel %vm3115_vm6, %v905_v59, 0 }
  0xc2   :  { %753 = vmatpush.bf16.msra.mxu2 %v715_v62  ;;  %v2284_v62 = vmov 0  }
  0xc3   :  { %2233 = vset.pattern.permute.xlu0 %v2284_v62  ;;  %2274 = vset.pattern.permute.xlu2 %v2284_v62 }
  0xc4   :  { %2275 = vset.pattern.permute.xlu1 %v2284_v62  ;;  %983 = vperm.xlu0 %2233, %v980_v63  }
  0xc6   :  { %2062 = vmatmul.msk.bf16.vlgmr.msra.gmra.mxu3 %vm3111_vm7, %v2058_v58 }
  0xc7   :  { %2059 = vmatmul.msk.bf16.vlgmr.msra.gmra.mxu0 %vm3111_vm7, %v2058_v58  ;;  %766 = vmatpush.bf16.msra.mxu3 %v718_v9  ;;  %v908_v58 = vpack.c.bf16 %v902_v55, %v902_v55 }
  0xc8   :  { %727 = vmatpush.bf16.msra.mxu0 %v709_v10 }
  0xc9   :  { %v922_v60 = vsel %vm3115_vm6, %v908_v58, 0 }
  0xd0   :  { %2065 = vmatmul.msk.bf16.vlgmr.msrb.gmra.mxu1 %vm3111_vm7, %v2063_v22 }
  0xd1   :  { %2066 = vmatmul.msk.bf16.vlgmr.msrb.gmra.mxu2 %vm3111_vm7, %v2063_v22  ;;  %842 = vmatpush.bf16.msrb.mxu1 %v814_v30 }
  0xd2   :  { %855 = vmatpush.bf16.msrb.mxu2 %v817_v32 }
  0xd6   :  { %2067 = vmatmul.msk.bf16.vlgmr.msrb.gmra.mxu3 %vm3111_vm7, %v2063_v22 }
  0xd7   :  { %2064 = vmatmul.msk.bf16.vlgmr.msrb.gmra.mxu0 %vm3111_vm7, %v2063_v22  ;;  %868 = vmatpush.bf16.msrb.mxu3 %v820_v35  ;;  %vm3145_vm7 = vcmp.lt.s32.totalorder %v2421_v25, 15 }
  0xd8   :  { %829 = vmatpush.bf16.msrb.mxu0 %v811_v36  ;;  %v901_v52 = vsel %vm3145_vm7, %v887_v43, 0.0  ;;  %vm3148_vm7 = vmmov %vm3147_vm9 }
  0xd9   :  { %v907_v53 = vpack.c.bf16 %v901_v52, %v901_v52  ;;  %vm3149_vm1 = vmmov %vm3148_vm7 }
  0xda   :  { %vm3150_vm8 = vmmov %vm3149_vm1 }
  0xdb   :  { %v919_v57 = vsel %vm3115_vm6, %v907_v53, 0  ;;  %vm3153_vm15 = vmmov %vm3149_vm1 }
  0xdc   :  { %vm3155_vm6 = vmmov %vm3149_vm1 }
  0xdd   :  { %vm3156_vm2 = vmmov %vm3149_vm1 }
  0xe0   :  { %2070 = vmatmul.msk.bf16.vlgmr.msra.gmra.mxu1 %vm3147_vm9, %v2068_v54  ;;  %vm3151_vm9 = vmmov %vm3149_vm1 }
  0xe1   :  { %2071 = vmatmul.msk.bf16.vlgmr.msra.gmra.mxu2 %vm3148_vm7, %v2068_v54  ;;  %944 = vmatpush.bf16.msra.mxu1 %v916_v17  ;;  %vm3154_vm7 = vmmov %vm3149_vm1 }
  0xe2   :  { %957 = vmatpush.bf16.msra.mxu2 %v919_v57 }
  0xe6   :  { %2072 = vmatmul.msk.bf16.vlgmr.msra.gmra.mxu3 %vm3149_vm1, %v2068_v54 }
  0xe7   :  { %2069 = vmatmul.msk.bf16.vlgmr.msra.gmra.mxu0 %vm3150_vm8, %v2068_v54  ;;  %970 = vmatpush.bf16.msra.mxu3 %v922_v60  ;;  %vm3152_vm8 = vmmov %vm3149_vm1 }
  0xe8   :  { %931 = vmatpush.bf16.msra.mxu0 %v913_v61 }
  0xf0   :  { %2075 = vmatmul.msk.bf16.vlgmr.msrb.gmra.mxu1 %vm3151_vm9, %v2073_v5  ;;  %vm3157_vm9 = vmmov %vm3149_vm1 }
  0xf1   :  { %2076 = vmatmul.msk.bf16.vlgmr.msrb.gmra.mxu2 %vm3149_vm1, %v2073_v5  ;;  %vm3160_vm1 = vcmp.lt.s32.totalorder %v2396_v8, 16 }
  0xf6   :  { %2077 = vmatmul.msk.bf16.vlgmr.msrb.gmra.mxu3 %vm3152_vm8, %v2073_v5  ;;  %vm3161_vm8 = vmmov %vm3160_vm1 }
  0xf7   :  { %2074 = vmatmul.msk.bf16.vlgmr.msrb.gmra.mxu0 %vm3153_vm15, %v2073_v5 }
  0xfd   :  { %v194_v6 = vpop.f32.mrf.mxu1 }
 0x100   :  { %2080 = vmatmul.msk.bf16.vlgmr.msra.gmra.mxu1 %vm3154_vm7, %v2078_v7  ;;  %vm3163_vm7 = vcmp.ge.s32.totalorder %v2435_v28, 1 }
 0x101   :  { %2081 = vmatmul.msk.bf16.vlgmr.msra.gmra.mxu2 %vm3155_vm6, %v2078_v7  ;;  %vm3158_vm6 = vcmp.lt.s32.totalorder %v2396_v8, 17 }
 0x102   :  { %vm3162_vm15 = vmmov %vm3158_vm6 }
 0x104   :  { %v181_v9 = vpop.f32.mrf.mxu0  ;;  %v207_v10 = vpop.f32.mrf.mxu2 }
 0x105   :  { %v196_v0 = vpop.f32.mrf.mxu1 }
 0x106   :  { %2082 = vmatmul.msk.bf16.vlgmr.msra.gmra.mxu3 %vm3156_vm2, %v2078_v7  ;;  %vm3159_vm2 = vcmp.lt.s32.totalorder %v2396_v8, 15 }
 0x107   :  { %2079 = vmatmul.msk.bf16.vlgmr.msra.gmra.mxu0 %vm3157_vm9, %v2078_v7 }
 0x109   :  { %v220_v1 = vpop.f32.mrf.mxu3 }
 0x10c   :  { %v183_v11 = vpop.f32.mrf.mxu0  ;;  %v209_v15 = vpop.f32.mrf.mxu2 }
 0x10d   :  { %v261_v16 = vpop.f32.mrf.mxu1 }
 0x10e   :  { %v262_v18 = vadd.f32 %v261_v16, %v194_v6 }
 0x111   :  { %v222_v21 = vpop.f32.mrf.mxu3 }
 0x114   :  { %v248_v4 = vpop.f32.mrf.mxu0  ;;  %v274_v2 = vpop.f32.mrf.mxu2 }
 0x115   :  { %v249_v22 = vadd.f32 %v248_v4, %v181_v9  ;;  %v275_v26 = vadd.f32 %v274_v2, %v207_v10  ;;  %v263_v29 = vpop.f32.mrf.mxu1 }
 0x119   :  { %v287_v30 = vpop.f32.mrf.mxu3 }
 0x11a   :  { %v288_v32 = vadd.f32 %v287_v30, %v220_v1 }
 0x11c   :  { %v250_v33 = vpop.f32.mrf.mxu0  ;;  %v276_v34 = vpop.f32.mrf.mxu2 }
 0x11d   :  { %v359_v35 = vpop.f32.mrf.mxu1 }
 0x11e   :  { %v390_v36 = vadd.f32 %v359_v35, %v262_v18 }
 0x121   :  { %v289_v37 = vpop.f32.mrf.mxu3 }
 0x124   :  { %v346_v38 = vpop.f32.mrf.mxu0  ;;  %v372_v39 = vpop.f32.mrf.mxu2 }
 0x125   :  { %v389_v41 = vadd.f32 %v346_v38, %v249_v22  ;;  %v391_v42 = vadd.f32 %v372_v39, %v275_v26  ;;  %v361_v43 = vpop.f32.mrf.mxu1 }
 0x129   :  { %v385_v44 = vpop.f32.mrf.mxu3 }
 0x12a   :  { %v392_v45 = vadd.f32 %v385_v44, %v288_v32 }
 0x12c   :  { %v348_v46 = vpop.f32.mrf.mxu0  ;;  %v374_v50 = vpop.f32.mrf.mxu2 }
 0x12d   :  { %v461_v52 = vpop.f32.mrf.mxu1 }
 0x12e   :  { %v492_v19 = vadd.f32 %v461_v52, %v390_v36 }
 0x131   :  { %v387_v53 = vpop.f32.mrf.mxu3 }
 0x134   :  { %v448_v54 = vpop.f32.mrf.mxu0  ;;  %v474_v55 = vpop.f32.mrf.mxu2 }
 0x135   :  { %v491_v12 = vadd.f32 %v448_v54, %v389_v41  ;;  %v493_v17 = vadd.f32 %v474_v55, %v391_v42  ;;  %v463_v57 = vpop.f32.mrf.mxu1 }
 0x139   :  { %v487_v58 = vpop.f32.mrf.mxu3 }
 0x13a   :  { %v494_v59 = vadd.f32 %v487_v58, %v392_v45 }
 0x13c   :  { %v450_v60 = vpop.f32.mrf.mxu0  ;;  %v476_v61 = vpop.f32.mrf.mxu2 }
 0x13d   :  { %v538_v62 = vpop.f32.mrf.mxu1 }
 0x13e   :  { %v569_v43 = vadd.f32 %v538_v62, %v492_v19 }
 0x141   :  { %v489_v63 = vpop.f32.mrf.mxu3 }
 0x144   :  { %v525_v5 = vpop.f32.mrf.mxu0  ;;  %v551_v6 = vpop.f32.mrf.mxu2 }
 0x145   :  { %v568_v7 = vadd.f32 %v525_v5, %v491_v12  ;;  %v540_v9 = vpop.f32.mrf.mxu1  ;;  %v570_v52 = vadd.f32 %v551_v6, %v493_v17 }
 0x146   :  { %v984_v9 = vpop.permute.xlu0 %983 }
 0x149   :  { %v564_v10 = vpop.f32.mrf.mxu3 }
 0x14a   :  { %v571_v5 = vadd.f32 %v564_v10, %v494_v59 }
 0x14c   :  { %v527_v0 = vpop.f32.mrf.mxu0  ;;  %v553_v1 = vpop.f32.mrf.mxu2 }
 0x14d   :  { %v640_v11 = vpop.f32.mrf.mxu1 }
 0x14e   :  { %v671_v45 = vadd.f32 %v640_v11, %v569_v43 }
 0x151   :  { %v566_v15 = vpop.f32.mrf.mxu3 }
 0x154   :  { %v627_v16 = vpop.f32.mrf.mxu0  ;;  %v653_v18 = vpop.f32.mrf.mxu2 }
 0x155   :  { %v642_v21 = vpop.f32.mrf.mxu1  ;;  %v670_v55 = vadd.f32 %v627_v16, %v568_v7  ;;  %v672_v12 = vadd.f32 %v653_v18, %v570_v52 }
 0x159   :  { %v666_v4 = vpop.f32.mrf.mxu3 }
 0x15a   :  { %v673_v15 = vadd.f32 %v666_v4, %v571_v5 }
 0x15c   :  { %v629_v2 = vpop.f32.mrf.mxu0  ;;  %v655_v22 = vpop.f32.mrf.mxu2 }
 0x15d   :  { %v742_v26 = vpop.f32.mrf.mxu1 }
 0x15e   :  { %v773_v53 = vadd.f32 %v742_v26, %v671_v45 }
 0x161   :  { %v668_v29 = vpop.f32.mrf.mxu3 }
 0x164   :  { %v729_v30 = vpop.f32.mrf.mxu0  ;;  %v755_v32 = vpop.f32.mrf.mxu2 }
 0x165   :  { %v744_v33 = vpop.f32.mrf.mxu1  ;;  %v772_v58 = vadd.f32 %v729_v30, %v670_v55  ;;  %v774_v60 = vadd.f32 %v755_v32, %v672_v12 }
 0x169   :  { %v768_v34 = vpop.f32.mrf.mxu3 }
 0x16a   :  { %v775_v6 = vadd.f32 %v768_v34, %v673_v15 }
 0x16c   :  { %v731_v35 = vpop.f32.mrf.mxu0  ;;  %v757_v36 = vpop.f32.mrf.mxu2 }
 0x16d   :  { %v844_v37 = vpop.f32.mrf.mxu1 }
 0x16e   :  { %v875_v57 = vadd.f32 %v844_v37, %v773_v53 }
 0x171   :  { %v770_v38 = vpop.f32.mrf.mxu3 }
 0x172   :  { %v1925_v38 = vld [vmem:[%s3090_s4 + $0x8] sm:$0xff] }
 0x174   :  { %v831_v39 = vpop.f32.mrf.mxu0  ;;  %v857_v41 = vpop.f32.mrf.mxu2 }
 0x175   :  { %v846_v42 = vpop.f32.mrf.mxu1  ;;  %v874_v0 = vadd.f32 %v831_v39, %v772_v58  ;;  %v876_v1 = vadd.f32 %v857_v41, %v774_v60 }
 0x179   :  { %v870_v44 = vpop.f32.mrf.mxu3 }
 0x17a   :  { %v877_v16 = vadd.f32 %v870_v44, %v775_v6 }
 0x17c   :  { %v833_v46 = vpop.f32.mrf.mxu0  ;;  %v859_v50 = vpop.f32.mrf.mxu2 }
 0x17d   :  { %v946_v54 = vpop.f32.mrf.mxu1 }
 0x17e   :  { %v977_v61 = vadd.f32 %v946_v54, %v875_v57 }
 0x180   :  { %v987_v11 = vadd.f32 %v984_v9, %v977_v61 }
 0x181   :  { %v872_v63 = vpop.f32.mrf.mxu3 }
 0x182   :  { %v2750_v18 = vmax.f32 %v987_v11, 0.0 }
 0x184   :  { %v933_v19 = vpop.f32.mrf.mxu0  ;;  %v959_v62 = vpop.f32.mrf.mxu2 }
 0x185   :  { %v976_v21 = vadd.f32 %v933_v19, %v874_v0  ;;  %v978_v2 = vadd.f32 %v959_v62, %v876_v1  ;;  %v948_v17 = vpop.f32.mrf.mxu1  ;;  %v2176_v62 = vld [vmem:[%s3091_s3 + $0x8] sm:$0xff] }
 0x187   :  { %v986_v22 = vadd.f32 %v984_v9, %v976_v21  ;;  %v988_v7 = vadd.f32 %v984_v9, %v978_v2 }
 0x189   :  { %v2752_v26 = vmax.f32 %v986_v22, 0.0  ;;  %v2754_v29 = vmax.f32 %v988_v7, 0.0  ;;  %v972_v59 = vpop.f32.mrf.mxu3 }
 0x18a   :  { %v979_v10 = vadd.f32 %v972_v59, %v877_v16 }
 0x18b   :  { %v2234_v4 = vpack.i.bf16 %v2754_v29, %v2750_v18  ;;  %v2254_v34 = vpack.i.bf16 %v2754_v29, %v2752_v26 }
 0x18c   :  { %v989_v30 = vadd.f32 %v984_v9, %v979_v10  ;;  %v961_v32 = vpop.f32.mrf.mxu2  ;;  %v935_v33 = vpop.f32.mrf.mxu0 }
 0x18d   :  { %2235 = vrot.lane.b32.xlu1 %v2234_v4, %s2276_s11 }
 0x18e   :  { %v2761_v35 = vmax.f32 %v989_v30, 0.0 }
 0x190   :  { %1000 = vrot.lane.b32.xlu0 %v2761_v35, %s2277_s14  ;;  %1022 = vrot.lane.b32.xlu2 %v2761_v35, %s2276_s11  ;;  %v2264_v36 = vpack.i.bf16 %v2761_v35, %v2752_v26 }
 0x191   :  { %v974_v37 = vpop.f32.mrf.mxu3 }
 0x195   :  { %1016 = vrot.lane.b32.xlu1 %v2752_v26, %s2276_s11 }
 0x198   :  { %1197 = vrot.lane.b32.xlu0 %v2761_v35, %s2278_s15  ;;  %2240 = vrot.lane.b32.xlu2 %v2234_v4, %s2277_s14 }
 0x19d   :  { %994 = vrot.lane.b32.xlu1 %v2752_v26, %s2277_s14 }
 0x1a0   :  { %1304 = vrot.lane.b32.xlu0 %v2761_v35, %s2279_s0  ;;  %2245 = vrot.lane.b32.xlu2 %v2234_v4, %s2278_s15 }
 0x1a5   :  { %1191 = vrot.lane.b32.xlu1 %v2752_v26, %s2278_s15 }
 0x1a8   :  { %1502 = vrot.lane.b32.xlu0 %v2761_v35, %s2280_s16  ;;  %2250 = vrot.lane.b32.xlu2 %v2234_v4, %s2279_s0 }
 0x1ad   :  { %1298 = vrot.lane.b32.xlu1 %v2752_v26, %s2279_s0 }
 0x1b0   :  { %1609 = vrot.lane.b32.xlu0 %v2761_v35, %s2281_s17  ;;  %2255 = vrot.lane.b32.xlu2 %v2254_v34, %s2280_s16 }
 0x1b5   :  { %1498 = vrot.lane.b32.xlu1 %v2750_v18, %s2280_s16 }
 0x1b8   :  { %1714 = vrot.lane.b32.xlu0 %v2754_v29, %s2282_s18  ;;  %2260 = vrot.lane.b32.xlu2 %v2254_v34, %s2281_s17 }
 0x1bd   :  { %1605 = vrot.lane.b32.xlu1 %v2750_v18, %s2281_s17 }
 0x1c0   :  { %1823 = vrot.lane.b32.xlu0 %v2761_v35, %s2283_s19  ;;  %2265 = vrot.lane.b32.xlu2 %v2264_v36, %s2282_s18 }
 0x1c5   :  { %1712 = vrot.lane.b32.xlu1 %v2750_v18, %s2282_s18 }
 0x1c8   :  { %1933 = vperm.xlu0 %2233, %v1925_v38   ;;  %2270 = vrot.lane.b32.xlu2 %v2254_v34, %s2283_s19 }
 0x1cd   :  { %1819 = vrot.lane.b32.xlu1 %v2750_v18, %s2283_s19 }
 0x1ea   :  { %v1023_v39 = vpop.permute.xlu2 %1022 }
 0x1f2   :  { %v2241_v41 = vpop.permute.xlu2 %2240 }
 0x1f3   :  { %v2243_v42 = vunpack.i.h.bf16 %v2241_v41  ;;  %v2242_v43 = vunpack.i.l.bf16 %v2241_v41 }
 0x1f5   :  { %v1003_v50 = vsel %vm3158_vm6, %v2242_v43, %v2243_v42 }
 0x1f6   :  { %v1008_v12 = vsel %vm2470_vm12, %v1003_v50, 0.0  ;;  %vm3164_vm12 = vcmask 1043456  }
 0x1f7   :  { %v1014_v0 = vpack.c.bf16 %v1008_v12, %v1008_v12  ;;  %vm3165_vm9 = vmmov %vm3164_vm12 }
 0x1f8   :  { %vm3166_vm6 = vmmov %vm3165_vm9 }
 0x1fa   :  { %v2807_v44 = vpop.permute.xlu2 %2245 }
 0x1fb   :  { %v2248_v45 = vunpack.i.h.bf16 %v2807_v44  ;;  %v2247_v46 = vunpack.i.l.bf16 %v2807_v44 }
 0x1fd   :  { %v1200_v55 = vsel %vm3159_vm2, %v2247_v46, %v2248_v45  ;;  %vm3169_vm2 = vmmov %vm3166_vm6 }
 0x1fe   :  { %v1205_v48 = vsel %vm2514_vm11, %v1200_v55, 0.0  ;;  %vm3168_vm11 = vmmov %vm3160_vm1  ;;  %v1130_v6 = vsel %vm3169_vm2, %v1014_v0, 0 }
 0x1ff   :  { %v2236_v52 = vpop.permute.xlu1 %2235  ;;  %v1212_v23 = vpack.c.bf16 %v1205_v48, %v1205_v48 }
 0x200   :  { %v2238_v53 = vunpack.i.h.bf16 %v2236_v52  ;;  %v2237_v54 = vunpack.i.l.bf16 %v2236_v52 }
 0x202   :  { %v1025_v57 = vsel %vm3160_vm1, %v2237_v54, %v2238_v53  ;;  %v1001_v58 = vpop.permute.xlu0 %1000  ;;  %v1024_v60 = vsel %vm3161_vm8, %v2238_v53, %v1023_v39  ;;  %v2251_v16 = vpop.permute.xlu2 %2250  ;;  %vm3171_vm8 = vcmp.lt.s32.totalorder %v2396_v8, 15 }
 0x203   :  { %v1002_v61 = vsel %vm3162_vm15, %v2243_v42, %v1001_v58  ;;  %v1038_v63 = vpack.c.bf16 %v1024_v60, %v1024_v60  ;;  %v1030_v9 = vsel %vm2413_vm3, %v1025_v57, 0.0  ;;  %vm3167_vm3 = vmmov %vm3160_vm1  ;;  %vm3170_vm1 = vcmask 64512  }
 0x204   :  { %v1009_v5 = vsel %vm3163_vm7, %v1002_v61, 0.0  ;;  %v1037_v19 = vpack.c.bf16 %v1030_v9, %v1030_v9  ;;  %vm3172_vm15 = vmmov %vm3170_vm1  ;;  %v2253_v34 = vunpack.i.h.bf16 %v2251_v16  ;;  %v2252_v36 = vunpack.i.l.bf16 %v2251_v16  ;;  %v2175_v61 = vld [vmem:[%s3091_s3] sm:$0xff]  ;;  %v2177_v16 = vld [vmem:[%s3091_s3 + $0x10] sm:$0xff] }
 0x205   :  { %v1015_v1 = vpack.c.bf16 %v1009_v5, %v1009_v5  ;;  %v1057_v15 = vsel %vm3164_vm12, %v1038_v63, 0  ;;  %vm3173_vm7 = vmmov %vm3169_vm2 }
 0x206   :  { %1108 = vmatpush.bf16.msrb.mxu3 %v1057_v15  ;;  %v1054_v11 = vsel %vm3165_vm9, %v1037_v19, 0  ;;  %v1229_v30 = vsel %vm3173_vm7, %v1212_v23, 0  ;;  %vm3174_vm12 = vmmov %vm3169_vm2  ;;  %vm3175_vm9 = vcmp.lt.s32.totalorder %v2435_v28, 15 }
 0x207   :  { %v1017_v21 = vpop.permute.xlu1 %1016  ;;  %v1133_v2 = vsel %vm3166_vm6, %v1015_v1, 0  ;;  %1094 = vmatpush.bf16.msrb.mxu2 %v1054_v11  ;;  %vm3177_vm6 = vmmov %vm3170_vm1 }
 0x208   :  { %v1026_v20 = vsel %vm3167_vm3, %v1017_v21, %v2237_v54  ;;  %v1027_v17 = vsel %vm3168_vm11, %v1023_v39, %v1017_v21  ;;  %vm3178_vm3 = vmmov %vm3169_vm2  ;;  %vm3179_vm11 = vcmp.lt.s32.totalorder %v2396_v8, 17 }
 0x209   :  { %v1028_v22 = vsel %vm2417_vm4, %v1027_v17, 0.0  ;;  %v1036_v7 = vpack.c.bf16 %v1026_v20, %v1026_v20  ;;  %2092 = vmatmul.msk.bf16.vlgmr.msrb.gmra.mxu3 %vm3170_vm1, %v2176_v62  ;;  %vm3176_vm4 = vmmov %vm3169_vm2 }
 0x20a   :  { %1184 = vmatpush.bf16.msra.mxu3 %v1133_v2  ;;  %v1035_v59 = vpack.c.bf16 %v1028_v22, %v1028_v22  ;;  %v1198_v10 = vpop.permute.xlu0 %1197  ;;  %2091 = vmatmul.msk.bf16.vlgmr.msrb.gmra.mxu2 %vm3172_vm15, %v2176_v62  ;;  %vm3180_vm2 = vmmov %vm3179_vm11  ;;  %vm3182_vm15 = vcmp.ge.s32.totalorder %v2443_v31, 1 }
 0x20b   :  { %1170 = vmatpush.bf16.msra.mxu2 %v1130_v6  ;;  %v1199_v4 = vsel %vm3171_vm8, %v2248_v45, %v1198_v10  ;;  %v1051_v32 = vsel %vm3174_vm12, %v1036_v7, 0  ;;  %vm3181_vm8 = vcmp.lt.s32.totalorder %v2396_v8, 1  ;;  %vm3184_vm12 = vcmp.ge.s32.totalorder %v2435_v28, 1 }
 0x20c   :  { %v1206_v24 = vsel %vm3175_vm9, %v1199_v4, 0.0  ;;  %1080 = vmatpush.bf16.msrb.mxu1 %v1051_v32  ;;  %v1048_v33 = vsel %vm3176_vm4, %v1035_v59, 0  ;;  %v1307_v45 = vsel %vm3181_vm8, %v2252_v36, %v2253_v34  ;;  %vm3183_vm7 = vmmov %vm3181_vm8  ;;  %v1411_v59 = vpack.c.bf16 %v2761_v35, %v2761_v35 }
 0x20d   :  { %v1213_v37 = vpack.c.bf16 %v1206_v24, %v1206_v24  ;;  %1066 = vmatpush.bf16.msrb.mxu0 %v1048_v33  ;;  %vm3185_vm9 = vmmov %vm3178_vm3  ;;  %v1409_v24 = vpack.c.bf16 %v2750_v18, %v2750_v18  ;;  %v1408_v35 = vpack.c.bf16 %v2752_v26, %v2752_v26 }
 0x20e   :  { %vm3186_vm4 = vmmov %vm3178_vm3 }
 0x20f   :  { %1269 = vmatpush.bf16.msrb.mxu2 %v1229_v30  ;;  %2090 = vmatmul.msk.bf16.vlgmr.msrb.gmra.mxu1 %vm3177_vm6, %v2176_v62  ;;  %v995_v38 = vpop.permute.xlu1 %994  ;;  %v1232_v39 = vsel %vm3178_vm3, %v1213_v37, 0  ;;  %vm3187_vm6 = vcmp.ge.s32.totalorder %v2421_v25, 1  ;;  %vm3192_vm8 = vmmov %vm3170_vm1  ;;  %v2256_v30 = vpop.permute.xlu2 %2255 }
 0x210   :  { %v1004_v41 = vsel %vm3179_vm11, %v995_v38, %v2242_v43  ;;  %v1005_v42 = vsel %vm3180_vm2, %v1001_v58, %v995_v38  ;;  %2089 = vmatmul.msk.bf16.vlgmr.msrb.gmra.mxu0 %vm3170_vm1, %v2176_v62  ;;  %1283 = vmatpush.bf16.msrb.mxu3 %v1232_v39  ;;  %v1312_v27 = vsel %vm3187_vm6, %v1307_v45, 0.0  ;;  %vm3191_vm2 = vcmp.lt.s32.totalorder %v2443_v31, 15  ;;  %vm3199_vm6 = vmmov %vm3170_vm1 }
 0x211   :  { %v1006_v50 = vsel %vm2429_vm5, %v1005_v42, 0.0  ;;  %v1007_v52 = vsel %vm3182_vm15, %v1004_v41, 0.0  ;;  %vm3188_vm5 = vmmov %vm3178_vm3  ;;  %v1319_v9 = vpack.c.bf16 %v1312_v27, %v1312_v27  ;;  %vm3189_vm3 = vcmp.lt.s32.totalorder %v2396_v8, 15 }
 0x212   :  { %v1012_v53 = vpack.c.bf16 %v1006_v50, %v1006_v50  ;;  %v1013_v54 = vpack.c.bf16 %v1007_v52, %v1007_v52  ;;  %v1305_v55 = vpop.permute.xlu0 %1304  ;;  %vm3190_vm11 = vmmov %vm3189_vm3  ;;  %v2178_v50 = vld [vmem:[%s3091_s3 + $0x18] sm:$0xff] }
 0x213   :  { %v1306_v43 = vsel %vm3183_vm7, %v2253_v34, %v1305_v55  ;;  %vm3193_vm15 = vmmov %vm3186_vm4  ;;  %v2257_v34 = vunpack.i.l.bf16 %v2256_v30 }
 0x214   :  { %v1313_v12 = vsel %vm3184_vm12, %v1306_v43, 0.0  ;;  %v1124_v57 = vsel %vm3185_vm9, %v1012_v53, 0  ;;  %v1127_v58 = vsel %vm3186_vm4, %v1013_v54, 0  ;;  %v1336_v44 = vsel %vm3193_vm15, %v1319_v9, 0  ;;  %vm3194_vm7 = vmmov %vm3186_vm4 }
 0x215   :  { %v1320_v60 = vpack.c.bf16 %v1313_v12, %v1313_v12  ;;  %1142 = vmatpush.bf16.msra.mxu0 %v1124_v57  ;;  %1156 = vmatpush.bf16.msra.mxu1 %v1127_v58  ;;  %vm3195_vm12 = vmmov %vm3186_vm4  ;;  %vm3197_vm9 = vcmp.lt.s32.totalorder %v2396_v8, 1 }
 0x216   :  { %vm3198_vm4 = vmmov %vm3197_vm9 }
 0x217   :  { %v1192_v63 = vpop.permute.xlu1 %1191  ;;  %v1339_v5 = vsel %vm3188_vm5, %v1320_v60, 0  ;;  %vm3200_vm5 = vcmp.ge.s32.totalorder %v2403_v13, 1  ;;  %vm3205_vm15 = vmmov %vm3170_vm1  ;;  %v2261_v43 = vpop.permute.xlu2 %2260 }
 0x218   :  { %v1201_v0 = vsel %vm3189_vm3, %v1192_v63, %v2247_v46  ;;  %v1202_v48 = vsel %vm3190_vm11, %v1198_v10, %v1192_v63  ;;  %vm3201_vm3 = vcmp.ge.s32.totalorder %v2443_v31, 1  ;;  %vm3202_vm11 = vmmov %vm3194_vm7  ;;  %v1410_v10 = vpack.c.bf16 %v2754_v29, %v2754_v29 }
 0x219   :  { %v1203_v1 = vsel %vm2495_vm13, %v1202_v48, 0.0  ;;  %v1204_v15 = vsel %vm3191_vm2, %v1201_v0, 0.0  ;;  %2100 = vmatmul.msk.bf16.vlgmr.msra.gmra.mxu3 %vm3170_vm1, %v2175_v61  ;;  %vm3196_vm13 = vmmov %vm3170_vm1  ;;  %v2258_v29 = vunpack.i.h.bf16 %v2256_v30  ;;  %v2262_v60 = vunpack.i.l.bf16 %v2261_v43 }
 0x21a   :  { %v1210_v19 = vpack.c.bf16 %v1203_v1, %v1203_v1  ;;  %v1211_v62 = vpack.c.bf16 %v1204_v15, %v1204_v15  ;;  %1390 = vmatpush.bf16.msra.mxu3 %v1339_v5  ;;  %2099 = vmatmul.msk.bf16.vlgmr.msra.gmra.mxu2 %vm3192_vm8, %v2175_v61  ;;  %vm3203_vm2 = vmmov %vm3194_vm7  ;;  %v1503_v33 = vpop.permute.xlu0 %1502 }
 0x21b   :  { %1376 = vmatpush.bf16.msra.mxu2 %v1336_v44  ;;  %vm3204_vm8 = vmmov %vm3203_vm2 }
 0x21c   :  { %v1223_v46 = vsel %vm3194_vm7, %v1210_v19, 0  ;;  %v1226_v11 = vsel %vm3195_vm12, %v1211_v62, 0  ;;  %v1430_v4 = vsel %vm3204_vm8, %v1411_v59, 0  ;;  %vm3206_vm7 = vmmov %vm3203_vm2  ;;  %vm3207_vm12 = vcmp.lt.s32.totalorder %v2396_v8, 127  ;;  %v2179_v62 = vld [vmem:[%s3091_s3 + $0x20] sm:$0xff] }
 0x21d   :  { %1241 = vmatpush.bf16.msrb.mxu0 %v1223_v46  ;;  %1255 = vmatpush.bf16.msrb.mxu1 %v1226_v11  ;;  %v1427_v32 = vsel %vm3206_vm7, %v1410_v10, 0  ;;  %vm3217_vm8 = vcmp.lt.s32.totalorder %v2443_v31, 15  ;;  %v2263_v31 = vunpack.i.h.bf16 %v2261_v43 }
 0x21f   :  { %2098 = vmatmul.msk.bf16.vlgmr.msra.gmra.mxu1 %vm3196_vm13, %v2175_v61  ;;  %v1299_v3 = vpop.permute.xlu1 %1298  ;;  %vm3208_vm13 = vmmov %vm3170_vm1  ;;  %v2266_v11 = vpop.permute.xlu2 %2265 }
 0x220   :  { %v1308_v21 = vsel %vm3197_vm9, %v1299_v3, %v2252_v36  ;;  %v1309_v2 = vsel %vm3198_vm4, %v1305_v55, %v1299_v3  ;;  %2097 = vmatmul.msk.bf16.vlgmr.msra.gmra.mxu0 %vm3199_vm6, %v2175_v61  ;;  %v1507_v36 = vsel %vm3207_vm12, %v1503_v33, %v2257_v34  ;;  %vm3209_vm9 = vmmov %vm3203_vm2 }
 0x221   :  { %v1310_v23 = vsel %vm3200_vm5, %v1309_v2, 0.0  ;;  %v1311_v20 = vsel %vm3201_vm3, %v1308_v21, 0.0  ;;  %v1424_v37 = vsel %vm3209_vm9, %v1409_v24, 0  ;;  %vm3210_vm4 = vmmov %vm3170_vm1  ;;  %vm3213_vm3 = vcmp.lt.s32.totalorder %v2435_v28, 15 }
 0x222   :  { %v1317_v17 = vpack.c.bf16 %v1310_v23, %v1310_v23  ;;  %v1318_v6 = vpack.c.bf16 %v1311_v20, %v1311_v20  ;;  %vm3211_vm6 = vmmov %vm3203_vm2  ;;  %v1511_v26 = vsel %vm3213_vm3, %v1507_v36, 0.0  ;;  %v1610_v58 = vpop.permute.xlu0 %1609  ;;  %v2268_v2 = vunpack.i.h.bf16 %v2266_v11 }
 0x223   :  { %v1421_v38 = vsel %vm3211_vm6, %v1408_v35, 0  ;;  %vm3212_vm5 = vmmov %vm3207_vm12  ;;  %v1518_v42 = vpack.c.bf16 %v1511_v26, %v1511_v26  ;;  %v2267_v23 = vunpack.i.l.bf16 %v2266_v11 }
 0x224   :  { %v1330_v22 = vsel %vm3202_vm11, %v1317_v17, 0  ;;  %v1333_v7 = vsel %vm3203_vm2, %v1318_v6, 0  ;;  %v1504_v18 = vsel %vm3212_vm5, %v2258_v29, %v1503_v33  ;;  %vm3214_vm11 = vcmp.lt.s32.totalorder %v2421_v25, 15  ;;  %vm3215_vm2 = vmmov %vm3212_vm5 }
 0x225   :  { %1348 = vmatpush.bf16.msra.mxu0 %v1330_v22  ;;  %1362 = vmatpush.bf16.msra.mxu1 %v1333_v7  ;;  %v1510_v41 = vsel %vm3214_vm11, %v1504_v18, 0.0  ;;  %vm3219_vm7 = vmmov %vm3210_vm4 }
 0x226   :  { %v1517_v53 = vpack.c.bf16 %v1510_v41, %v1510_v41  ;;  %vm3220_vm12 = vmmov %vm3211_vm6 }
 0x227   :  { %v1499_v39 = vpop.permute.xlu1 %1498  ;;  %v1537_v55 = vsel %vm3220_vm12, %v1518_v42, 0  ;;  %vm3222_vm9 = vmmov %vm3211_vm6 }
 0x228   :  { %v1505_v45 = vsel %vm3215_vm2, %v1499_v39, %v2258_v29  ;;  %v1534_v57 = vsel %vm3222_vm9, %v1517_v53, 0  ;;  %vm3224_vm6 = vmmov %vm3219_vm7  ;;  %v2271_v29 = vpop.permute.xlu2 %2270 }
 0x229   :  { %2110 = vmatmul.msk.bf16.vlgmr.msrb.gmra.mxu3 %vm3170_vm1, %v2177_v16  ;;  %vm3216_vm1 = vmmov %vm3215_vm2  ;;  %v1509_v28 = vsel %vm3217_vm8, %v1505_v45, 0.0  ;;  %v2272_v26 = vunpack.i.l.bf16 %v2271_v29 }
 0x22a   :  { %1481 = vmatpush.bf16.msrb.mxu3 %v1430_v4  ;;  %2109 = vmatmul.msk.bf16.vlgmr.msrb.gmra.mxu2 %vm3205_vm15, %v2177_v16  ;;  %v1506_v52 = vsel %vm3216_vm1, %v2257_v34, %v1499_v39  ;;  %vm3218_vm15 = vcmp.lt.s32.totalorder %v2403_v13, 15  ;;  %v1516_v12 = vpack.c.bf16 %v1509_v28, %v1509_v28  ;;  %vm3225_vm5 = vmmov %vm3222_vm9  ;;  %vm3229_vm1 = vcmp.ge.s32.totalorder %v2421_v25, 1 }
 0x22b   :  { %1467 = vmatpush.bf16.msrb.mxu2 %v1427_v32  ;;  %v1508_v54 = vsel %vm3218_vm15, %v1506_v52, 0.0  ;;  %vm3226_vm3 = vmmov %vm3224_vm6  ;;  %v2180_v32 = vld [vmem:[%s3091_s3 + $0x28] sm:$0xff] }
 0x22c   :  { %v1515_v27 = vpack.c.bf16 %v1508_v54, %v1508_v54  ;;  %v1531_v63 = vsel %vm3225_vm5, %v1516_v12, 0  ;;  %vm3227_vm11 = vmmov %vm3225_vm5 }
 0x22d   :  { %vm3234_vm12 = vmmov %vm3225_vm5 }
 0x22e   :  { %v1528_v5 = vsel %vm3227_vm11, %v1515_v27, 0  ;;  %vm3236_vm9 = vmmov %vm3225_vm5 }
 0x22f   :  { %2108 = vmatmul.msk.bf16.vlgmr.msrb.gmra.mxu1 %vm3208_vm13, %v2177_v16  ;;  %vm3221_vm13 = vmmov %vm3210_vm4  ;;  %v1606_v48 = vpop.permute.xlu1 %1605 }
 0x230   :  { %1453 = vmatpush.bf16.msrb.mxu1 %v1424_v37  ;;  %2107 = vmatmul.msk.bf16.vlgmr.msrb.gmra.mxu0 %vm3210_vm4, %v2177_v16  ;;  %vm3223_vm4 = vcmp.lt.s32.totalorder %v2396_v8, 113  ;;  %v1715_v16 = vpop.permute.xlu0 %1714 }
 0x231   :  { %1439 = vmatpush.bf16.msrb.mxu0 %v1421_v38  ;;  %v1614_v61 = vsel %vm3223_vm4, %v1610_v58, %v2262_v60  ;;  %vm3228_vm2 = vmmov %vm3223_vm4  ;;  %vm3237_vm4 = vcmp.lt.s32.totalorder %v2396_v8, 112 }
 0x232   :  { %v1611_v9 = vsel %vm3228_vm2, %v2263_v31, %v1610_v58  ;;  %v1618_v0 = vsel %vm2642_vm10, %v1614_v61, 0.0  ;;  %vm3230_vm8 = vmmov %vm3228_vm2  ;;  %vm3232_vm10 = vcmp.ge.s32.totalorder %v2403_v13, 1  ;;  %v1721_v51 = vsel %vm3237_vm4, %v2268_v2, %v2267_v23 }
 0x233   :  { %v1617_v1 = vsel %vm3229_vm1, %v1611_v9, 0.0  ;;  %v1625_v15 = vpack.c.bf16 %v1618_v0, %v1618_v0  ;;  %v1612_v19 = vsel %vm3230_vm8, %v1606_v48, %v2263_v31  ;;  %vm3231_vm15 = vmmov %vm3228_vm2  ;;  %v1725_v10 = vsel %vm2630_vm0, %v1721_v51, 0.0  ;;  %v2183_v31 = vld [vmem:[%s3091_s3 + $0x40] sm:$0xff] }
 0x234   :  { %v1613_v44 = vsel %vm3231_vm15, %v2262_v60, %v1606_v48  ;;  %v1624_v46 = vpack.c.bf16 %v1617_v1, %v1617_v1  ;;  %v1616_v56 = vsel %vm2622_vm14, %v1612_v19, 0.0  ;;  %vm3238_vm14 = vmmov %vm3226_vm3  ;;  %v1732_v24 = vpack.c.bf16 %v1725_v10, %v1725_v10 }
 0x235   :  { %v1615_v3 = vsel %vm3232_vm10, %v1613_v44, 0.0  ;;  %v1644_v21 = vsel %vm3234_vm12, %v1625_v15, 0  ;;  %v1623_v20 = vpack.c.bf16 %v1616_v56, %v1616_v56  ;;  %vm3242_vm11 = vmmov %vm3237_vm4  ;;  %vm3244_vm1 = vnez %v3132_v49  ;;  %v1924_v15 = vld [vmem:[%s3090_s4] sm:$0xff] }
 0x236   :  { %v1641_v17 = vsel %vm3236_vm9, %v1624_v46, 0  ;;  %v1622_v6 = vpack.c.bf16 %v1615_v3, %v1615_v3  ;;  %v1718_v4 = vsel %vm3242_vm11, %v1715_v16, %v2268_v2  ;;  %vm3243_vm2 = vmmov %vm3237_vm4  ;;  %v2273_v49 = vunpack.i.h.bf16 %v2271_v29  ;;  %1928 = vperm.xlu2 %2274, %v1924_v15  }
 0x237   :  { %v1713_v59 = vpop.permute.xlu1 %1712  ;;  %v1731_v33 = vpack.c.bf16 %v1718_v4, %v1718_v4  ;;  %vm3245_vm8 = vmmov %vm3243_vm2  ;;  %vm3250_vm12 = vcmp.lt.s32.totalorder %v2396_v8, 111 }
 0x238   :  { %v1719_v30 = vsel %vm3243_vm2, %v1713_v59, %v1715_v16  ;;  %v1720_v34 = vsel %vm3245_vm8, %v2267_v23, %v1713_v59  ;;  %v1824_v38 = vpop.permute.xlu0 %1823  ;;  %vm3261_vm8 = vcmp.lt.s32.totalorder %v2403_v13, 15 }
 0x239   :  { %2120 = vmatmul.msk.bf16.vlgmr.msra.gmra.mxu3 %vm3219_vm7, %v2178_v50  ;;  %vm3233_vm7 = vmmov %vm3226_vm3  ;;  %v1723_v35 = vsel %vm3244_vm1, %v1719_v30, 0.0  ;;  %v1729_v18 = vpack.c.bf16 %v1720_v34, %v1720_v34  ;;  %v1828_v39 = vsel %vm3250_vm12, %v1824_v38, %v2272_v26  ;;  %vm3260_vm1 = vnez %v3141_v40  ;;  %v2182_v40 = vld [vmem:[%s3091_s3 + $0x38] sm:$0xff] }
 0x23a   :  { %1588 = vmatpush.bf16.msra.mxu3 %v1537_v55  ;;  %2119 = vmatmul.msk.bf16.vlgmr.msra.gmra.mxu2 %vm3221_vm13, %v2178_v50  ;;  %vm3235_vm13 = vmmov %vm3226_vm3  ;;  %v1730_v36 = vpack.c.bf16 %v1723_v35, %v1723_v35  ;;  %v2181_v55 = vld [vmem:[%s3091_s3 + $0x30] sm:$0xff] }
 0x23b   :  { %1574 = vmatpush.bf16.msra.mxu2 %v1534_v57 }
 0x23f   :  { %2118 = vmatmul.msk.bf16.vlgmr.msra.gmra.mxu1 %vm3224_vm6, %v2178_v50  ;;  %vm3239_vm6 = vmmov %vm3225_vm5  ;;  %v1820_v52 = vpop.permute.xlu1 %1819 }
 0x240   :  { %1560 = vmatpush.bf16.msra.mxu1 %v1531_v63  ;;  %2117 = vmatmul.msk.bf16.vlgmr.msra.gmra.mxu0 %vm3226_vm3, %v2178_v50  ;;  %v1638_v22 = vsel %vm3239_vm6, %v1623_v20, 0  ;;  %vm3240_vm5 = vmmov %vm3226_vm3 }
 0x241   :  { %1546 = vmatpush.bf16.msra.mxu0 %v1528_v5  ;;  %vm3241_vm3 = vmmov %vm3239_vm6 }
 0x242   :  { %v1635_v7 = vsel %vm3241_vm3, %v1622_v6, 0  ;;  %vm3246_vm15 = vmmov %vm3240_vm5 }
 0x243   :  { %vm3247_vm0 = vmmov %vm3241_vm3  ;;  %vm3257_vm3 = vcmp.lt.s32.totalorder %v2421_v25, 15 }
 0x244   :  { %v1751_v14 = vsel %vm3247_vm0, %v1732_v24, 0  ;;  %vm3248_vm10 = vmmov %vm3240_vm5 }
 0x245   :  { %vm3252_vm9 = vmmov %vm3247_vm0 }
 0x246   :  { %v1745_v41 = vsel %vm3252_vm9, %v1730_v36, 0  ;;  %vm3253_vm4 = vmmov %vm3240_vm5 }
 0x247   :  { %vm3255_vm6 = vmmov %vm3250_vm12 }
 0x248   :  { %v1825_v45 = vsel %vm3255_vm6, %v2273_v49, %v1824_v38  ;;  %vm3258_vm11 = vmmov %vm3255_vm6 }
 0x249   :  { %2130 = vmatmul.msk.bf16.vlgmr.msrb.gmra.mxu3 %vm3233_vm7, %v2179_v62  ;;  %vm3249_vm7 = vmmov %vm3247_vm0  ;;  %v1831_v53 = vsel %vm3257_vm3, %v1825_v45, 0.0  ;;  %v1826_v54 = vsel %vm3258_vm11, %v1820_v52, %v2273_v49 }
 0x24a   :  { %1695 = vmatpush.bf16.msrb.mxu3 %v1644_v21  ;;  %2129 = vmatmul.msk.bf16.vlgmr.msrb.gmra.mxu2 %vm3235_vm13, %v2179_v62  ;;  %v1748_v37 = vsel %vm3249_vm7, %v1731_v33, 0  ;;  %vm3251_vm13 = vmmov %vm3240_vm5  ;;  %v1838_v12 = vpack.c.bf16 %v1831_v53, %v1831_v53 }
 0x24b   :  { %1681 = vmatpush.bf16.msrb.mxu2 %v1641_v17  ;;  %vm3259_vm2 = vmmov %vm3255_vm6 }
 0x24c   :  { %v1827_v43 = vsel %vm3259_vm2, %v2272_v26, %v1820_v52  ;;  %vm3264_vm7 = vmmov %vm3247_vm0 }
 0x24d   :  { %v1829_v57 = vsel %vm3261_vm8, %v1827_v43, 0.0  ;;  %v1855_v27 = vsel %vm3264_vm7, %v1838_v12, 0  ;;  %vm3265_vm12 = vmmov %vm3253_vm4 }
 0x24e   :  { %v1836_v60 = vpack.c.bf16 %v1829_v57, %v1829_v57  ;;  %vm3267_vm9 = vmmov %vm3253_vm4 }
 0x24f   :  { %2128 = vmatmul.msk.bf16.vlgmr.msrb.gmra.mxu1 %vm3238_vm14, %v2179_v62  ;;  %vm3254_vm14 = vmmov %vm3247_vm0 }
 0x250   :  { %1667 = vmatpush.bf16.msrb.mxu1 %v1638_v22  ;;  %2127 = vmatmul.msk.bf16.vlgmr.msrb.gmra.mxu0 %vm3240_vm5, %v2179_v62  ;;  %v1742_v42 = vsel %vm3254_vm14, %v1729_v18, 0  ;;  %vm3256_vm5 = vnez %v3144_v47  ;;  %v1830_v47 = vsel %vm3260_vm1, %v1826_v54, 0.0  ;;  %vm3269_vm14 = vmmov %vm3267_vm9 }
 0x251   :  { %1653 = vmatpush.bf16.msrb.mxu0 %v1635_v7  ;;  %v1832_v50 = vsel %vm3256_vm5, %v1828_v39, 0.0  ;;  %v1837_v58 = vpack.c.bf16 %v1830_v47, %v1830_v47  ;;  %vm3270_vm6 = vmmov %vm3267_vm9 }
 0x252   :  { %v1839_v28 = vpack.c.bf16 %v1832_v50, %v1832_v50  ;;  %vm3271_vm5 = vmmov %vm3270_vm6 }
 0x253   :  { %vm3272_vm3 = vmmov %vm3271_vm5 }
 0x254   :  { %v1858_v25 = vsel %vm3247_vm0, %v1839_v28, 0  ;;  %vm3273_vm11 = vmmov %vm3272_vm3 }
 0x255   :  { %vm3274_vm2 = vmmov %vm3272_vm3 }
 0x256   :  { %vm3275_vm1 = vmmov %vm3274_vm2 }
 0x257   :  { %vm3276_vm8 = vmmov %vm3275_vm1 }
 0x259   :  { %2140 = vmatmul.msk.bf16.vlgmr.msra.gmra.mxu3 %vm3246_vm15, %v2180_v32  ;;  %vm3262_vm15 = vmmov %vm3253_vm4 }
 0x25a   :  { %1802 = vmatpush.bf16.msra.mxu3 %v1751_v14  ;;  %2139 = vmatmul.msk.bf16.vlgmr.msra.gmra.mxu2 %vm3248_vm10, %v2180_v32  ;;  %vm3263_vm10 = vmmov %vm3253_vm4 }
 0x25b   :  { %1788 = vmatpush.bf16.msra.mxu2 %v1748_v37 }
 0x25f   :  { %2138 = vmatmul.msk.bf16.vlgmr.msra.gmra.mxu1 %vm3251_vm13, %v2180_v32  ;;  %vm3266_vm13 = vmmov %vm3247_vm0 }
 0x260   :  { %1774 = vmatpush.bf16.msra.mxu1 %v1745_v41  ;;  %2137 = vmatmul.msk.bf16.vlgmr.msra.gmra.mxu0 %vm3253_vm4, %v2180_v32  ;;  %v1852_v8 = vsel %vm3266_vm13, %v1837_v58, 0  ;;  %vm3268_vm4 = vmmov %vm3247_vm0 }
 0x261   :  { %1760 = vmatpush.bf16.msra.mxu0 %v1742_v42  ;;  %v1849_v13 = vsel %vm3268_vm4, %v1836_v60, 0 }
 0x269   :  { %2150 = vmatmul.msk.bf16.vlgmr.msrb.gmra.mxu3 %vm3262_vm15, %v2181_v55  ;;  %vm1971_vm15 = vcmask 130048  }
 0x26a   :  { %1909 = vmatpush.bf16.msrb.mxu3 %v1858_v25  ;;  %2149 = vmatmul.msk.bf16.vlgmr.msrb.gmra.mxu2 %vm3263_vm10, %v2181_v55 }
 0x26b   :  { %1895 = vmatpush.bf16.msrb.mxu2 %v1855_v27 }
 0x26f   :  { %2148 = vmatmul.msk.bf16.vlgmr.msrb.gmra.mxu1 %vm3265_vm12, %v2181_v55 }
 0x270   :  { %1881 = vmatpush.bf16.msrb.mxu1 %v1852_v8  ;;  %2147 = vmatmul.msk.bf16.vlgmr.msrb.gmra.mxu0 %vm3267_vm9, %v2181_v55 }
 0x271   :  { %1867 = vmatpush.bf16.msrb.mxu0 %v1849_v13 }
 0x279   :  { %2160 = vmatmul.msk.bf16.vlgmr.msra.gmra.mxu3 %vm3269_vm14, %v2182_v40 }
 0x27a   :  { %2159 = vmatmul.msk.bf16.vlgmr.msra.gmra.mxu2 %vm3270_vm6, %v2182_v40 }
 0x27f   :  { %2158 = vmatmul.msk.bf16.vlgmr.msra.gmra.mxu1 %vm3271_vm5, %v2182_v40 }
 0x280   :  { %2157 = vmatmul.msk.bf16.vlgmr.msra.gmra.mxu0 %vm3272_vm3, %v2182_v40 }
 0x289   :  { %2170 = vmatmul.msk.bf16.vlgmr.msrb.gmra.mxu3 %vm3273_vm11, %v2183_v31 }
 0x28a   :  { %2169 = vmatmul.msk.bf16.vlgmr.msrb.gmra.mxu2 %vm3274_vm2, %v2183_v31 }
 0x28c   :  { %v1082_v61 = vpop.f32.mrf.mxu1  ;;  %v1110_v63 = vpop.f32.mrf.mxu3 }
 0x28d   :  { %v1068_v5 = vpop.f32.mrf.mxu0  ;;  %v1096_v9 = vpop.f32.mrf.mxu2 }
 0x28f   :  { %2168 = vmatmul.msk.bf16.vlgmr.msrb.gmra.mxu1 %vm3275_vm1, %v2183_v31 }
 0x290   :  { %2167 = vmatmul.msk.bf16.vlgmr.msrb.gmra.mxu0 %vm3276_vm8, %v2183_v31 }
 0x294   :  { %v1084_v0 = vpop.f32.mrf.mxu1  ;;  %v1112_v48 = vpop.f32.mrf.mxu3 }
 0x295   :  { %v1070_v1 = vpop.f32.mrf.mxu0  ;;  %v1098_v19 = vpop.f32.mrf.mxu2 }
 0x29c   :  { %v1158_v62 = vpop.f32.mrf.mxu1  ;;  %v1186_v44 = vpop.f32.mrf.mxu3 }
 0x29d   :  { %v1159_v46 = vadd.f32 %v1158_v62, %v1082_v61  ;;  %v1187_v11 = vadd.f32 %v1186_v44, %v1110_v63  ;;  %v1144_v56 = vpop.f32.mrf.mxu0  ;;  %v1172_v21 = vpop.f32.mrf.mxu2 }
 0x29e   :  { %v1145_v3 = vadd.f32 %v1144_v56, %v1068_v5  ;;  %v1173_v2 = vadd.f32 %v1172_v21, %v1096_v9 }
 0x2a4   :  { %v1160_v23 = vpop.f32.mrf.mxu1  ;;  %v1188_v20 = vpop.f32.mrf.mxu3 }
 0x2a5   :  { %v1161_v17 = vadd.f32 %v1160_v23, %v1084_v0  ;;  %v1189_v6 = vadd.f32 %v1188_v20, %v1112_v48  ;;  %v1146_v51 = vpop.f32.mrf.mxu0  ;;  %v1174_v7 = vpop.f32.mrf.mxu2 }
 0x2a6   :  { %v1147_v22 = vadd.f32 %v1146_v51, %v1070_v1  ;;  %v1175_v16 = vadd.f32 %v1174_v7, %v1098_v19  ;;  %v1965_v51 = vld [vmem:[%s3092_s6] sm:$0xff] }
 0x2a7   :  { %1968 = vperm.xlu1 %2275, %v1965_v51  }
 0x2ac   :  { %v1257_v59 = vpop.f32.mrf.mxu1  ;;  %v1285_v10 = vpop.f32.mrf.mxu3 }
 0x2ad   :  { %v1291_v4 = vadd.f32 %v1257_v59, %v1159_v46  ;;  %v1293_v30 = vadd.f32 %v1285_v10, %v1187_v11  ;;  %v1243_v32 = vpop.f32.mrf.mxu0  ;;  %v1271_v33 = vpop.f32.mrf.mxu2 }
 0x2ae   :  { %v1290_v24 = vadd.f32 %v1243_v32, %v1145_v3  ;;  %v1292_v35 = vadd.f32 %v1271_v33, %v1173_v2 }
 0x2b4   :  { %v1287_v34 = vpop.f32.mrf.mxu3  ;;  %v1259_v14 = vpop.f32.mrf.mxu1 }
 0x2b5   :  { %v1297_v29 = vadd.f32 %v1287_v34, %v1189_v6  ;;  %v1295_v36 = vadd.f32 %v1259_v14, %v1161_v17  ;;  %v1245_v37 = vpop.f32.mrf.mxu0  ;;  %v1273_v18 = vpop.f32.mrf.mxu2 }
 0x2b6   :  { %v1294_v38 = vadd.f32 %v1245_v37, %v1147_v22  ;;  %v1296_v26 = vadd.f32 %v1273_v18, %v1175_v16 }
 0x2bc   :  { %v1364_v49 = vpop.f32.mrf.mxu1  ;;  %v1392_v39 = vpop.f32.mrf.mxu3 }
 0x2bd   :  { %v1398_v41 = vadd.f32 %v1364_v49, %v1291_v4  ;;  %v1400_v42 = vadd.f32 %v1392_v39, %v1293_v30  ;;  %v1350_v45 = vpop.f32.mrf.mxu0  ;;  %v1378_v52 = vpop.f32.mrf.mxu2 }
 0x2be   :  { %v1397_v50 = vadd.f32 %v1350_v45, %v1290_v24  ;;  %v1399_v53 = vadd.f32 %v1378_v52, %v1292_v35 }
 0x2c4   :  { %v1366_v28 = vpop.f32.mrf.mxu1  ;;  %v1394_v54 = vpop.f32.mrf.mxu3 }
 0x2c5   :  { %v1402_v55 = vadd.f32 %v1366_v28, %v1295_v36  ;;  %v1404_v43 = vadd.f32 %v1394_v54, %v1297_v29  ;;  %v1352_v12 = vpop.f32.mrf.mxu0  ;;  %v1380_v57 = vpop.f32.mrf.mxu2 }
 0x2c6   :  { %v1401_v47 = vadd.f32 %v1352_v12, %v1294_v38  ;;  %v1403_v25 = vadd.f32 %v1380_v57, %v1296_v26  ;;  %v1929_v26 = vpop.permute.xlu2 %1928 }
 0x2cc   :  { %v1455_v58 = vpop.f32.mrf.mxu1  ;;  %v1483_v27 = vpop.f32.mrf.mxu3 }
 0x2cd   :  { %v1441_v60 = vpop.f32.mrf.mxu0  ;;  %v1469_v8 = vpop.f32.mrf.mxu2  ;;  %v1489_v16 = vadd.f32 %v1455_v58, %v1398_v41  ;;  %v1491_v59 = vadd.f32 %v1483_v27, %v1400_v42 }
 0x2ce   :  { %v1488_v4 = vadd.f32 %v1441_v60, %v1397_v50  ;;  %v1490_v32 = vadd.f32 %v1469_v8, %v1399_v53 }
 0x2d4   :  { %v1457_v13 = vpop.f32.mrf.mxu1  ;;  %v1485_v40 = vpop.f32.mrf.mxu3 }
 0x2d5   :  { %v1443_v31 = vpop.f32.mrf.mxu0  ;;  %v1471_v61 = vpop.f32.mrf.mxu2  ;;  %v1493_v49 = vadd.f32 %v1457_v13, %v1402_v55  ;;  %v1495_v42 = vadd.f32 %v1485_v40, %v1404_v43 }
 0x2d6   :  { %v1492_v54 = vadd.f32 %v1443_v31, %v1401_v47  ;;  %v1494_v12 = vadd.f32 %v1471_v61, %v1403_v25 }
 0x2dc   :  { %v1562_v63 = vpop.f32.mrf.mxu1  ;;  %v1590_v5 = vpop.f32.mrf.mxu3 }
 0x2dd   :  { %v1548_v9 = vpop.f32.mrf.mxu0  ;;  %v1576_v0 = vpop.f32.mrf.mxu2  ;;  %v1596_v24 = vadd.f32 %v1562_v63, %v1489_v16  ;;  %v1598_v33 = vadd.f32 %v1590_v5, %v1491_v59 }
 0x2de   :  { %v1595_v35 = vadd.f32 %v1548_v9, %v1488_v4  ;;  %v1597_v34 = vadd.f32 %v1576_v0, %v1490_v32 }
 0x2e4   :  { %v1564_v48 = vpop.f32.mrf.mxu1  ;;  %v1592_v1 = vpop.f32.mrf.mxu3 }
 0x2e5   :  { %v1550_v15 = vpop.f32.mrf.mxu0  ;;  %v1578_v19 = vpop.f32.mrf.mxu2  ;;  %v1600_v57 = vadd.f32 %v1564_v48, %v1493_v49  ;;  %v1602_v60 = vadd.f32 %v1592_v1, %v1495_v42 }
 0x2e6   :  { %v1599_v9 = vadd.f32 %v1550_v15, %v1492_v54  ;;  %v1601_v0 = vadd.f32 %v1578_v19, %v1494_v12 }
 0x2ec   :  { %v1669_v62 = vpop.f32.mrf.mxu1  ;;  %v1697_v44 = vpop.f32.mrf.mxu3 }
 0x2ed   :  { %v1655_v46 = vpop.f32.mrf.mxu0  ;;  %v1683_v11 = vpop.f32.mrf.mxu2  ;;  %v1703_v14 = vadd.f32 %v1669_v62, %v1596_v24  ;;  %v1705_v29 = vadd.f32 %v1697_v44, %v1598_v33 }
 0x2ee   :  { %v1702_v36 = vadd.f32 %v1655_v46, %v1595_v35  ;;  %v1704_v37 = vadd.f32 %v1683_v11, %v1597_v34  ;;  %v1960_v35 = vld [vmem:[%s3094_s5] sm:$0xf] }
 0x2f4   :  { %v1671_v56 = vpop.f32.mrf.mxu1  ;;  %v1699_v3 = vpop.f32.mrf.mxu3 }
 0x2f5   :  { %v1657_v21 = vpop.f32.mrf.mxu0  ;;  %v1685_v2 = vpop.f32.mrf.mxu2  ;;  %v1707_v13 = vadd.f32 %v1671_v56, %v1600_v57  ;;  %v1709_v62 = vadd.f32 %v1699_v3, %v1602_v60 }
 0x2f6   :  { %v1706_v40 = vadd.f32 %v1657_v21, %v1599_v9  ;;  %v1934_v21 = vpop.permute.xlu0 %1933 }
 0x2fc   :  { %v1776_v23 = vpop.f32.mrf.mxu1  ;;  %v1804_v20 = vpop.f32.mrf.mxu3 }
 0x2fd   :  { %v1762_v17 = vpop.f32.mrf.mxu0  ;;  %v1790_v6 = vpop.f32.mrf.mxu2  ;;  %v1810_v38 = vadd.f32 %v1776_v23, %v1703_v14  ;;  %v1812_v18 = vadd.f32 %v1804_v20, %v1705_v29  ;;  %v1708_v23 = vadd.f32 %v1685_v2, %v1601_v0 }
 0x2fe   :  { %v1809_v39 = vadd.f32 %v1762_v17, %v1702_v36  ;;  %v1811_v52 = vadd.f32 %v1790_v6, %v1704_v37 }
 0x304   :  { %v1778_v22 = vpop.f32.mrf.mxu1  ;;  %v1806_v7 = vpop.f32.mrf.mxu3 }
 0x305   :  { %v1764_v10 = vpop.f32.mrf.mxu0  ;;  %v1792_v30 = vpop.f32.mrf.mxu2  ;;  %v1814_v47 = vadd.f32 %v1778_v22, %v1707_v13  ;;  %v1816_v25 = vadd.f32 %v1806_v7, %v1709_v62 }
 0x306   :  { %v1813_v61 = vadd.f32 %v1764_v10, %v1706_v40  ;;  %v1815_v15 = vadd.f32 %v1792_v30, %v1708_v23 }
 0x30c   :  { %v1883_v45 = vpop.f32.mrf.mxu1  ;;  %v1911_v41 = vpop.f32.mrf.mxu3 }
 0x30d   :  { %v1917_v50 = vadd.f32 %v1883_v45, %v1810_v38  ;;  %v1919_v28 = vadd.f32 %v1911_v41, %v1812_v18  ;;  %v1869_v53 = vpop.f32.mrf.mxu0  ;;  %v1897_v27 = vpop.f32.mrf.mxu2 }
 0x30e   :  { %v1916_v58 = vadd.f32 %v1869_v53, %v1809_v39  ;;  %v1918_v8 = vadd.f32 %v1897_v27, %v1811_v52 }
 0x30f   :  { %v1937_v63 = vadd.f32 %v1929_v26, %v1917_v50  ;;  %v1939_v5 = vadd.f32 %v1929_v26, %v1919_v28 }
 0x310   :  { %v1936_v55 = vadd.f32 %v1929_v26, %v1916_v58  ;;  %v1938_v44 = vadd.f32 %v1929_v26, %v1918_v8 }
 0x311   :  { %v1945_v43 = vmax.f32 %v1937_v63, 0.0  ;;  %v1947_v11 = vmax.f32 %v1939_v5, 0.0 }
 0x312   :  { %v1944_v46 = vmax.f32 %v1936_v55, 0.0  ;;  %v1946_v31 = vmax.f32 %v1938_v44, 0.0 }
 0x313   :  { %1953 = vst [vmem:[%s3093_s8 + $0x8] sm:$0xff] %v1945_v43 }
 0x314   :  { %1952 = vst [vmem:[%s3093_s8] sm:$0xff] %v1944_v46  ;;  %v1885_v48 = vpop.f32.mrf.mxu1  ;;  %v1913_v1 = vpop.f32.mrf.mxu3 }
 0x315   :  { %1954 = vst [vmem:[%s3093_s8 + $0x10] sm:$0xff] %v1946_v31  ;;  %v1921_v19 = vadd.f32 %v1885_v48, %v1814_v47  ;;  %v1923_v56 = vadd.f32 %v1913_v1, %v1816_v25  ;;  %v1871_v3 = vpop.f32.mrf.mxu0  ;;  %v1899_v20 = vpop.f32.mrf.mxu2 }
 0x316   :  { %1955 = vst [vmem:[%s3093_s8 + $0x18] sm:$0xff] %v1947_v11  ;;  %v1920_v2 = vadd.f32 %v1871_v3, %v1813_v61  ;;  %v1922_v51 = vadd.f32 %v1899_v20, %v1815_v15 }
 0x317   :  { %v1941_v17 = vadd.f32 %v1934_v21, %v1921_v19  ;;  %v1943_v6 = vadd.f32 %v1934_v21, %v1923_v56 }
 0x318   :  { %v1940_v22 = vadd.f32 %v1934_v21, %v1920_v2  ;;  %v1942_v59 = vadd.f32 %v1934_v21, %v1922_v51 }
 0x319   :  { %v1949_v7 = vmax.f32 %v1941_v17, 0.0  ;;  %v1951_v16 = vmax.f32 %v1943_v6, 0.0  ;;  %v1969_v34 = vpop.permute.xlu1 %1968 }
 0x31a   :  { %v1948_v10 = vmax.f32 %v1940_v22, 0.0  ;;  %v1950_v32 = vmax.f32 %v1942_v59, 0.0 }
 0x31b   :  { %1957 = vst [vmem:[%s3093_s8 + $0x28] sm:$0xff] %v1949_v7  ;;  %v1962_v4 = vpack.c.bf16 %v1949_v7, %v1945_v43  ;;  %v1964_v30 = vpack.c.bf16 %v1951_v16, %v1947_v11 }
 0x31c   :  { %1959 = vst [vmem:[%s3093_s8 + $0x38] sm:$0xff] %v1951_v16  ;;  %v1961_v24 = vpack.c.bf16 %v1948_v10, %v1944_v46  ;;  %v1963_v33 = vpack.c.bf16 %v1950_v32, %v1946_v31 }
 0x31d   :  { %1956 = vst [vmem:[%s3093_s8 + $0x20] sm:$0xff] %v1948_v10  ;;  %1995 = vmatpush.bf16.msra.mxu1 %v1962_v4  ;;  %2021 = vmatpush.bf16.msra.mxu3 %v1964_v30 }
 0x31e   :  { %1958 = vst [vmem:[%s3093_s8 + $0x30] sm:$0xff] %v1950_v32  ;;  %1982 = vmatpush.bf16.msra.mxu0 %v1961_v24  ;;  %2008 = vmatpush.bf16.msra.mxu2 %v1963_v33 }
 0x320   :  { %2174 = vmatmul.msk.bf16.vlgmr.msra.gmra.mxu3 %vm1971_vm15, %v1960_v35  ;;  %2172 = vmatmul.msk.bf16.vlgmr.msra.gmra.mxu1 %vm1971_vm15, %v1960_v35 }
 0x321   :  { %2171 = vmatmul.msk.bf16.vlgmr.msra.gmra.mxu0 %vm1971_vm15, %v1960_v35  ;;  %2173 = vmatmul.msk.bf16.vlgmr.msra.gmra.mxu2 %vm1971_vm15, %v1960_v35 }
 0x39d   :  { %v1997_v14 = vpop.f32.mrf.mxu1 }
 0x39e   :  { %v1984_v29 = vpop.f32.mrf.mxu0  ;;  %v1998_v36 = vadd.f32 %v1997_v14, %v1969_v34 }
 0x39f   :  { %v1985_v37 = vadd.f32 %v1984_v29, %v1969_v34 }
 0x3a0   :  { %2028 = vst [vmem:[%s3095_s7 + $0x8] sm:$0xff] %v1998_v36 }
 0x3a1   :  { %2027 = vst [vmem:[%s3095_s7] sm:$0xff] %v1985_v37 }
 0x3a3   :  { %v2023_v38 = vpop.f32.mrf.mxu3 }
 0x3a4   :  { %v2024_v18 = vadd.f32 %v2023_v38, %v1969_v34  ;;  %v2010_v26 = vpop.f32.mrf.mxu2 }
 0x3a5   :  { %v1999_v49 = vpop.f32.mrf.mxu1  ;;  %v2011_v39 = vadd.f32 %v2010_v26, %v1969_v34 }
 0x3a6   :  { %2030 = vst [vmem:[%s3095_s7 + $0x18] sm:$0xff] %v2024_v18  ;;  %v1986_v45 = vpop.f32.mrf.mxu0 }
 0x3a7   :  { %2029 = vst [vmem:[%s3095_s7 + $0x10] sm:$0xff] %v2011_v39 }
 0x3ab   :  { %v2025_v41 = vpop.f32.mrf.mxu3 }
 0x3ac   :  { %v2012_v42 = vpop.f32.mrf.mxu2 }

</bundles_post_ra>
